<compile_context>
chip_gen: v7x
topology: tpu7x:2x2x1
jax: 0.10.0
libtpu: 0.0.40
codegen_flags: <defaults>
</compile_context>

<pallas_src>
import functools
import math

import jax
import jax.numpy as jnp
from jax.experimental import pallas as pl
from jax.experimental.pallas import tpu as pltpu


# ----------------------------- glue (plain JAX) -----------------------------

def patch_partition(x, patch_size):
    """(B, C, H, W, E) -> (B*nH*nW, C, patch_size*patch_size, E), pad_hw."""
    B, C, H, W, E = x.shape
    pad_h = (-H) % patch_size
    pad_w = (-W) % patch_size
    if pad_h or pad_w:
        x = jnp.pad(x, ((0, 0), (0, 0), (0, pad_h), (0, pad_w), (0, 0)))
    Hp, Wp = H + pad_h, W + pad_w
    x = x.reshape(B, C, Hp // patch_size, patch_size, Wp // patch_size, patch_size, E)
    x = x.transpose(0, 2, 4, 1, 3, 5, 6)  # (B, nH, nW, C, p, p, E)
    x = x.reshape(-1, C, patch_size * patch_size, E)
    return x, (Hp, Wp)


def patch_unpartition(x, patch_size, pad_hw, orig_shape):
    B, C, H, W, E = orig_shape
    Hp, Wp = pad_hw
    nH, nW = Hp // patch_size, Wp // patch_size
    x = x.reshape(B, nH, nW, C, patch_size, patch_size, E)
    x = x.transpose(0, 3, 1, 4, 2, 5, 6).reshape(B, C, Hp, Wp, E)
    return x[:, :, :H, :W, :]


# ------------------------------ Pallas kernel -------------------------------

def _block_kernel(px_ref, wpatch_ref, wqkv_ref, bqkv_ref, wproj_ref, hmask_ref,
                  vecs_ref, w1_ref, b1_ref, w2_ref, b2_ref, out_ref,
                  *, tb, seq_c, pix_p, emb_e, eps, fold_patch, tile_w2):
    C, P, E = seq_c, pix_p, emb_e
    N = tb * C
    inv_sqrt2 = 0.7071067811865476

    # --- patch -> token projection ------------------------------------------
    # Do NOT keep the (N, P*E) slab live in registers: read it here for the
    # dot and re-read px_ref again for the final residual add.
    if fold_patch:
        # einsum('npe,pe->ne') folded into one lane-dense bf16 MXU matmul
        # against the precomputed (P*E, E) matrix.
        x0 = jnp.dot(px_ref[...].astype(jnp.bfloat16), wpatch_ref[...],
                     preferred_element_type=jnp.float32)          # (N, E)
    else:
        # VMEM-friendly fallback for large P*E^2: chunked VPU multiply-acc.
        # TODO(synk): switch to lax.fori_loop if P is very large.
        x0 = px_ref[:, 0:E] * wpatch_ref[0:1, :]
        for p in range(1, P):
            x0 = x0 + px_ref[:, p * E:(p + 1) * E] * wpatch_ref[p:p + 1, :]

    # --- QKV projection (bf16 operands, f32 accumulate) ---
    # hd**-0.5 is pre-folded into the Q columns of the weight/bias.
    qkv = jnp.dot(x0.astype(jnp.bfloat16), wqkv_ref[...],
                  preferred_element_type=jnp.float32) + bqkv_ref[...]
    q = qkv[:, :E]
    k = qkv[:, E:2 * E]
    v = qkv[:, 2 * E:]

    q3 = q.reshape(tb, C, E)
    k3 = k.reshape(tb, C, E)
    v3 = v.reshape(tb, C, E)

    # --- multi-head attention, all heads fused (no per-head loop, no concat).
    # qk[b,i,j,e] = q[b,i,e]*k[b,j,e]; the block-diagonal ones mask sums
    # within each head AND broadcasts the logit across that head's lanes, so
    # softmax + the weighted V-sum remain plain per-lane VPU ops.
    qk = q3[:, :, None, :] * k3[:, None, :, :]                      # (tb,C,C,E)
    logits = jnp.dot(qk.reshape(N * C, E).astype(jnp.bfloat16), hmask_ref[...],
                     preferred_element_type=jnp.float32).reshape(tb, C, C, E)
    logits = logits - jnp.max(logits, axis=2, keepdims=True)
    p_attn = jnp.exp(logits)
    p_attn = p_attn * pl.reciprocal(jnp.sum(p_attn, axis=2, keepdims=True),
                                    approx=True)
    attn = jnp.sum(p_attn * v3[:, None, :, :], axis=2).reshape(N, E)

    # --- output projection (bias = packed vector row 0) ---
    attn = jnp.dot(attn.astype(jnp.bfloat16), wproj_ref[...],
                   preferred_element_type=jnp.float32) + vecs_ref[0:1, :]

    def layernorm(z, g, b):
        mu = jnp.mean(z, axis=-1, keepdims=True)
        var = jnp.mean((z - mu) ** 2, axis=-1, keepdims=True)
        return (z - mu) * jax.lax.rsqrt(var + eps) * g + b

    # x = x + norm1(attn(x))
    x1 = x0 + layernorm(attn, vecs_ref[1:2, :], vecs_ref[2:3, :])   # (N, E)

    # norm2 + MLP (per-token result is identical for every pixel of the patch)
    x2 = layernorm(x1, vecs_ref[3:4, :], vecs_ref[4:5, :])
    h1 = jnp.dot(x2.astype(jnp.bfloat16), w1_ref[...],
                 preferred_element_type=jnp.float32) + b1_ref[...]
    h1 = 0.5 * h1 * (1.0 + jax.lax.erf(h1 * inv_sqrt2))             # exact GELU

    if tile_w2:
        # mlp_w2/b2 are pre-tiled (mlp_dim, P*E)/(1, P*E): the dot emits the
        # lane-dense replicated result directly -> no per-step jnp.tile on the
        # store path.
        mlp_wide = jnp.dot(h1.astype(jnp.bfloat16), w2_ref[...],
                           preferred_element_type=jnp.float32) + b2_ref[...]
    else:
        mlp = jnp.dot(h1.astype(jnp.bfloat16), w2_ref[...],
                      preferred_element_type=jnp.float32) + b2_ref[...]
        mlp_wide = jnp.tile(mlp, (1, P))

    out_ref[...] = (px_ref[...] + mlp_wide).astype(out_ref.dtype)   # (N, P*E)


# --------------------------- parameter preparation ---------------------------

def prepare_params(params, *, patch_size, num_heads, eps=1e-5):
    """One-time (outside the hot path): bf16 casts, scale folding, packing."""
    E = params["qkv_w"].shape[0]
    mlp_dim = params["mlp_w1"].shape[1]
    P = patch_size * patch_size
    assert E % num_heads == 0, "embedding_dim must be divisible by num_heads"
    hd = E // num_heads
    scale = hd ** -0.5

    # Fold the attention scale into the Q columns of the QKV projection.
    q_scale = jnp.concatenate([jnp.full((E,), scale, jnp.float32),
                               jnp.ones((2 * E,), jnp.float32)])
    qkv_w = (params["qkv_w"].astype(jnp.float32) * q_scale[None, :]
             ).astype(jnp.bfloat16)
    qkv_b = params["qkv_b"].astype(jnp.float32) * q_scale[None, :]

    # Folded patch-projection matrix (gated on size: P*E^2 bf16 bytes).
    fold_patch = (P * E * E * 2) <= (4 << 20)
    pp = params["patch_proj"].astype(jnp.float32)
    if fold_patch:
        w_patch = (pp[:, :, None] * jnp.eye(E, dtype=jnp.float32)[None, :, :]
                   ).reshape(P * E, E).astype(jnp.bfloat16)          # (P*E, E)
    else:
        w_patch = pp                                                 # (P, E) f32

    # Pre-tiled second MLP layer so the kernel emits a lane-dense (rows, P*E)
    # result without a per-step replication (gated on size).
    tile_w2 = (mlp_dim * P * E * 2) <= (8 << 20)
    if tile_w2:
        mlp_w2 = jnp.tile(params["mlp_w2"], (1, P)).astype(jnp.bfloat16)
        mlp_b2 = jnp.tile(params["mlp_b2"], (1, P))
    else:
        mlp_w2 = params["mlp_w2"].astype(jnp.bfloat16)
        mlp_b2 = params["mlp_b2"]

    head_ids = jnp.arange(E) // hd
    head_mask = (head_ids[:, None] == head_ids[None, :]).astype(jnp.bfloat16)

    vecs = jnp.concatenate([params["proj_b"], params["ln1_g"], params["ln1_b"],
                            params["ln2_g"], params["ln2_b"]], axis=0)  # (5, E)

    prep = dict(
        w_patch=w_patch, qkv_w=qkv_w, qkv_b=qkv_b,
        proj_w=params["proj_w"].astype(jnp.bfloat16),
        head_mask=head_mask, vecs=vecs,
        mlp_w1=params["mlp_w1"].astype(jnp.bfloat16),
        mlp_b1=params["mlp_b1"],
        mlp_w2=mlp_w2, mlp_b2=mlp_b2)
    cfg = dict(patch_size=patch_size, num_heads=num_heads, eps=eps,
               emb=E, mlp_dim=mlp_dim, fold_patch=fold_patch, tile_w2=tile_w2)
    return prep, cfg


# --------------------------------- wrapper -----------------------------------

def cross_channel_attention_block(x, prep, cfg, *, tile_rows=512):
    B, C, H, W, E = x.shape
    assert E == cfg["emb"]
    patch_size = cfg["patch_size"]
    P = patch_size * patch_size
    mlp_dim = cfg["mlp_dim"]

    px, pad_hw = patch_partition(x, patch_size)        # (Bp, C, P, E)
    Bp = px.shape[0]

    # --- choose how many patches to batch per grid step (M = TB*C rows) ---
    # Target ~tile_rows token rows (big, lane-dense DMA tiles for v5e/v6e),
    # but cap so the "parallel" grid has >= 2 steps whenever possible so both
    # v7x TensorCores get work and the pipeline overlaps DMA with compute.
    step = 8 // math.gcd(C, 8)                         # keep TB*C % 8 == 0
    bp_ceil = -(-Bp // step) * step
    tb_target = max(step, (max(1, tile_rows // C) // step) * step)
    if bp_ceil >= 2 * step:
        tb_cap = (bp_ceil // 2 // step) * step
    else:
        tb_cap = bp_ceil
    TB = max(step, min(tb_target, tb_cap))
    Bp_pad = -(-Bp // TB) * TB
    rows = TB * C

    # --- lane-dense layout: one row per (patch, channel) token, P*E cols ---
    px2 = px.reshape(Bp * C, P * E)
    if Bp_pad != Bp:
        px2 = jnp.pad(px2, ((0, (Bp_pad - Bp) * C), (0, 0)))

    kernel = functools.partial(
        _block_kernel, tb=TB, seq_c=C, pix_p=P, emb_e=E, eps=cfg["eps"],
        fold_patch=cfg["fold_patch"], tile_w2=cfg["tile_w2"])

    def full_spec(shape):
        return pl.BlockSpec(shape, lambda b: (0,) * len(shape))

    operands = (prep["w_patch"], prep["qkv_w"], prep["qkv_b"], prep["proj_w"],
                prep["head_mask"], prep["vecs"], prep["mlp_w1"], prep["mlp_b1"],
                prep["mlp_w2"], prep["mlp_b2"])

    # --- size the VMEM limit from actual need (not a hard-coded 48 MiB) ---
    slab_bytes = rows * P * E * x.dtype.itemsize        # one in/out slab
    weight_bytes = sum(int(a.size) * a.dtype.itemsize for a in operands)
    vmem_need = 4 * slab_bytes + 2 * weight_bytes + (2 << 20)
    vmem_limit = int(min(max(vmem_need, 8 << 20), 56 << 20))  # < v7x 64 MiB

    out2 = pl.pallas_call(
        kernel,
        out_shape=jax.ShapeDtypeStruct((Bp_pad * C, P * E), x.dtype),
        grid=(Bp_pad // TB,),
        in_specs=[
            pl.BlockSpec((rows, P * E), lambda b: (b, 0)),     # patched_x slab
            full_spec(prep["w_patch"].shape),                  # patch proj
            full_spec((E, 3 * E)), full_spec((1, 3 * E)),      # qkv W (bf16), b
            full_spec((E, E)),                                 # proj W (bf16)
            full_spec((E, E)),                                 # head mask (bf16)
            full_spec((5, E)),                                 # packed vectors
            full_spec((E, mlp_dim)), full_spec((1, mlp_dim)),  # mlp W1 (bf16), b1
            full_spec(prep["mlp_w2"].shape),                   # mlp W2 (bf16, tiled)
            full_spec(prep["mlp_b2"].shape),                   # mlp b2 (tiled)
        ],
        out_specs=pl.BlockSpec((rows, P * E), lambda b: (b, 0)),
        compiler_params=pltpu.CompilerParams(
            dimension_semantics=("parallel",),
            vmem_limit_bytes=vmem_limit),
    )(px2, *operands)

    out = out2[:Bp * C].reshape(Bp, C, P, E)
    return patch_unpartition(out, patch_size, pad_hw, (B, C, H, W, E))


# ------------------------- pure-JAX reference check -------------------------

def reference(x, params, *, patch_size, num_heads, eps=1e-5):
    B, C, H, W, E = x.shape
    px, pad_hw = patch_partition(x, patch_size)
    Bp = px.shape[0]
    hd = E // num_heads

    x0 = jnp.einsum("bcpe,pe->bce", px, params["patch_proj"])
    qkv = x0 @ params["qkv_w"] + params["qkv_b"][0]
    qkv = qkv.reshape(Bp, C, 3, num_heads, hd).transpose(2, 0, 3, 1, 4)
    qkv = qkv.reshape(3, Bp * num_heads, C, hd)
    q, k, v = qkv[0], qkv[1], qkv[2]
    attn = jax.nn.softmax((q * hd ** -0.5) @ jnp.swapaxes(k, -2, -1), axis=-1)
    o = (attn @ v).reshape(Bp, num_heads, C, hd).transpose(0, 2, 1, 3).reshape(Bp, C, E)
    o = o @ params["proj_w"] + params["proj_b"][0]

    def ln(z, g, b):
        mu = z.mean(-1, keepdims=True)
        var = ((z - mu) ** 2).mean(-1, keepdims=True)
        return (z - mu) / jnp.sqrt(var + eps) * g[0] + b[0]

    x1 = x0 + ln(o, params["ln1_g"], params["ln1_b"])
    xb = jnp.broadcast_to(x1[:, :, None, :], px.shape)
    h = ln(xb, params["ln2_g"], params["ln2_b"])
    h = h @ params["mlp_w1"] + params["mlp_b1"][0]
    h = 0.5 * h * (1.0 + jax.lax.erf(h / math.sqrt(2.0)))
    h = h @ params["mlp_w2"] + params["mlp_b2"][0]
    out = px + h
    return patch_unpartition(out, patch_size, pad_hw, (B, C, H, W, E))


# ---------------------------------- main -------------------------------------

def init_params(key, E, mlp_dim, patch_size):
    ks = jax.random.split(key, 10)
    u = lambda k, shape, fan_in: jax.random.uniform(
        k, shape, jnp.float32, -1.0 / math.sqrt(fan_in), 1.0 / math.sqrt(fan_in))
    return dict(
        patch_proj=jax.random.normal(ks[0], (patch_size * patch_size, E), jnp.float32),
        qkv_w=u(ks[1], (E, 3 * E), E),
        qkv_b=u(ks[2], (1, 3 * E), E),
        proj_w=u(ks[3], (E, E), E),
        proj_b=u(ks[4], (1, E), E),
        ln1_g=jnp.ones((1, E), jnp.float32),
        ln1_b=jnp.zeros((1, E), jnp.float32),
        ln2_g=jnp.ones((1, E), jnp.float32),
        ln2_b=jnp.zeros((1, E), jnp.float32),
        mlp_w1=u(ks[5], (E, mlp_dim), E),
        mlp_b1=u(ks[6], (1, mlp_dim), E),
        mlp_w2=u(ks[7], (mlp_dim, E), mlp_dim),
        mlp_b2=u(ks[8], (1, E), mlp_dim),
    )


if __name__ == "__main__":
    B, C, H, W, E = 2, 4, 8, 8, 32
    patch_size = 4
    num_heads = 4
    mlp_dim = 64

    key = jax.random.PRNGKey(0)
    kx, kp = jax.random.split(key)
    x = jax.random.normal(kx, (B, C, H, W, E), jnp.float32)
    params = init_params(kp, E, mlp_dim, patch_size)

    # One-time parameter prep (bf16 casts, scale folding, packing) — hoisted
    # out of the per-call hot path.
    prep, cfg = prepare_params(params, patch_size=patch_size, num_heads=num_heads)

    out = cross_channel_attention_block(x, prep, cfg)
    out = jax.block_until_ready(out)

    ref = jax.block_until_ready(
        reference(x, params, patch_size=patch_size, num_heads=num_heads))

    assert out.shape == (B, C, H, W, E)
    assert jnp.allclose(out, ref, atol=5e-2, rtol=5e-2), "mismatch vs reference"
    print("KERNEL_OK")
</pallas_src>

<mosaic_0001>
module attributes {stable_mosaic.version = 11 : i64} {
  func.func @_block_kernel(%arg0: i32, %arg1: memref<16x512xf32, #tpu.memory_space<vmem>>, %arg2: memref<512x32xbf16, #tpu.memory_space<vmem>>, %arg3: memref<32x96xbf16, #tpu.memory_space<vmem>>, %arg4: memref<1x96xf32, #tpu.memory_space<vmem>>, %arg5: memref<32x32xbf16, #tpu.memory_space<vmem>>, %arg6: memref<32x32xbf16, #tpu.memory_space<vmem>>, %arg7: memref<5x32xf32, #tpu.memory_space<vmem>>, %arg8: memref<32x64xbf16, #tpu.memory_space<vmem>>, %arg9: memref<1x64xf32, #tpu.memory_space<vmem>>, %arg10: memref<64x512xbf16, #tpu.memory_space<vmem>>, %arg11: memref<1x512xf32, #tpu.memory_space<vmem>>, %arg12: memref<16x512xf32, #tpu.memory_space<vmem>>) attributes {dimension_semantics = [#tpu.dimension_semantics<parallel>], iteration_bounds = array<i64: 2>, scalar_prefetch = 0 : i64, scratch_operands = 0 : i64, tpu.core_type = #tpu.core_type<tc>, window_params = [{transform_indices = @transform_0, window_bounds = array<i64: 16, 512>}, {pipeline_mode = #tpu.pipeline_mode<synchronous>, transform_indices = @transform_1, window_bounds = array<i64: 512, 32>}, {pipeline_mode = #tpu.pipeline_mode<synchronous>, transform_indices = @transform_2, window_bounds = array<i64: 32, 96>}, {pipeline_mode = #tpu.pipeline_mode<synchronous>, transform_indices = @transform_3, window_bounds = array<i64: 1, 96>}, {pipeline_mode = #tpu.pipeline_mode<synchronous>, transform_indices = @transform_4, window_bounds = array<i64: 32, 32>}, {pipeline_mode = #tpu.pipeline_mode<synchronous>, transform_indices = @transform_5, window_bounds = array<i64: 32, 32>}, {pipeline_mode = #tpu.pipeline_mode<synchronous>, transform_indices = @transform_6, window_bounds = array<i64: 5, 32>}, {pipeline_mode = #tpu.pipeline_mode<synchronous>, transform_indices = @transform_7, window_bounds = array<i64: 32, 64>}, {pipeline_mode = #tpu.pipeline_mode<synchronous>, transform_indices = @transform_8, window_bounds = array<i64: 1, 64>}, {pipeline_mode = #tpu.pipeline_mode<synchronous>, transform_indices = @transform_9, window_bounds = array<i64: 64, 512>}, {pipeline_mode = #tpu.pipeline_mode<synchronous>, transform_indices = @transform_10, window_bounds = array<i64: 1, 512>}, {transform_indices = @transform_11, window_bounds = array<i64: 16, 512>}]} {
    %c0 = arith.constant 0 : index
    %c0_0 = arith.constant 0 : index
    %0 = vector.load %arg1[%c0, %c0_0] : memref<16x512xf32, #tpu.memory_space<vmem>>, vector<16x512xf32>
    %1 = arith.truncf %0 : vector<16x512xf32> to vector<16x512xbf16>
    %c0_1 = arith.constant 0 : index
    %c0_2 = arith.constant 0 : index
    %2 = vector.load %arg2[%c0_1, %c0_2] : memref<512x32xbf16, #tpu.memory_space<vmem>>, vector<512x32xbf16>
    %cst = arith.constant dense<0.000000e+00> : vector<16x32xf32>
    %3 = tpu.matmul %1, %2, %cst {dimension_numbers = #tpu.dot_dimension_numbers<[1], [0], [0], [1], [0, 0, 1, 1], [], []>} : vector<16x512xbf16>, vector<512x32xbf16>, vector<16x32xf32> -> vector<16x32xf32>
    %4 = arith.truncf %3 : vector<16x32xf32> to vector<16x32xbf16>
    %c0_3 = arith.constant 0 : index
    %c0_4 = arith.constant 0 : index
    %5 = vector.load %arg3[%c0_3, %c0_4] : memref<32x96xbf16, #tpu.memory_space<vmem>>, vector<32x96xbf16>
    %cst_5 = arith.constant dense<0.000000e+00> : vector<16x96xf32>
    %6 = tpu.matmul %4, %5, %cst_5 {dimension_numbers = #tpu.dot_dimension_numbers<[1], [0], [0], [1], [0, 0, 1, 1], [], []>} : vector<16x32xbf16>, vector<32x96xbf16>, vector<16x96xf32> -> vector<16x96xf32>
    %c0_6 = arith.constant 0 : index
    %c0_7 = arith.constant 0 : index
    %7 = vector.load %arg4[%c0_6, %c0_7] : memref<1x96xf32, #tpu.memory_space<vmem>>, vector<1x96xf32>
    %8 = vector.broadcast %7 : vector<1x96xf32> to vector<16x96xf32>
    %9 = arith.addf %6, %8 : vector<16x96xf32>
    %10 = vector.extract_strided_slice %9 {offsets = [0, 0], sizes = [16, 32], strides = [1, 1]} : vector<16x96xf32> to vector<16x32xf32>
    %11 = vector.extract_strided_slice %9 {offsets = [0, 32], sizes = [16, 32], strides = [1, 1]} : vector<16x96xf32> to vector<16x32xf32>
    %12 = vector.extract_strided_slice %9 {offsets = [0, 64], sizes = [16, 32], strides = [1, 1]} : vector<16x96xf32> to vector<16x32xf32>
    %13 = vector.shape_cast %10 : vector<16x32xf32> to vector<4x4x32xf32>
    %14 = vector.shape_cast %11 : vector<16x32xf32> to vector<4x4x32xf32>
    %15 = vector.shape_cast %12 : vector<16x32xf32> to vector<4x4x32xf32>
    %16 = vector.shape_cast %13 : vector<4x4x32xf32> to vector<4x4x1x32xf32>
    %17 = vector.shape_cast %14 : vector<4x4x32xf32> to vector<4x1x4x32xf32>
    %18 = vector.broadcast %16 : vector<4x4x1x32xf32> to vector<4x4x4x32xf32>
    %19 = vector.broadcast %17 : vector<4x1x4x32xf32> to vector<4x4x4x32xf32>
    %20 = arith.mulf %18, %19 : vector<4x4x4x32xf32>
    %21 = vector.shape_cast %20 : vector<4x4x4x32xf32> to vector<64x32xf32>
    %22 = arith.truncf %21 : vector<64x32xf32> to vector<64x32xbf16>
    %c0_8 = arith.constant 0 : index
    %c0_9 = arith.constant 0 : index
    %23 = vector.load %arg6[%c0_8, %c0_9] : memref<32x32xbf16, #tpu.memory_space<vmem>>, vector<32x32xbf16>
    %cst_10 = arith.constant dense<0.000000e+00> : vector<64x32xf32>
    %24 = tpu.matmul %22, %23, %cst_10 {dimension_numbers = #tpu.dot_dimension_numbers<[1], [0], [0], [1], [0, 0, 1, 1], [], []>} : vector<64x32xbf16>, vector<32x32xbf16>, vector<64x32xf32> -> vector<64x32xf32>
    %25 = vector.shape_cast %24 : vector<64x32xf32> to vector<4x4x4x32xf32>
    %cst_11 = arith.constant dense<0xFF800000> : vector<4x4x32xf32>
    %26 = vector.multi_reduction <maximumf>, %25, %cst_11 [2] : vector<4x4x4x32xf32> to vector<4x4x32xf32>
    %27 = vector.shape_cast %26 : vector<4x4x32xf32> to vector<4x4x1x32xf32>
    %28 = vector.broadcast %27 : vector<4x4x1x32xf32> to vector<4x4x4x32xf32>
    %29 = arith.subf %25, %28 : vector<4x4x4x32xf32>
    %30 = math.exp %29 : vector<4x4x4x32xf32>
    %cst_12 = arith.constant dense<0.000000e+00> : vector<4x4x32xf32>
    %31 = vector.multi_reduction <add>, %30, %cst_12 [2] : vector<4x4x4x32xf32> to vector<4x4x32xf32>
    %32 = vector.shape_cast %31 : vector<4x4x32xf32> to vector<4x4x1x32xf32>
    %33 = tpu.reciprocal %32 {approx = true} : vector<4x4x1x32xf32> -> vector<4x4x1x32xf32>
    %34 = vector.broadcast %33 : vector<4x4x1x32xf32> to vector<4x4x4x32xf32>
    %35 = arith.mulf %30, %34 : vector<4x4x4x32xf32>
    %36 = vector.shape_cast %15 : vector<4x4x32xf32> to vector<4x1x4x32xf32>
    %37 = vector.broadcast %36 : vector<4x1x4x32xf32> to vector<4x4x4x32xf32>
    %38 = arith.mulf %35, %37 : vector<4x4x4x32xf32>
    %cst_13 = arith.constant dense<0.000000e+00> : vector<4x4x32xf32>
    %39 = vector.multi_reduction <add>, %38, %cst_13 [2] : vector<4x4x4x32xf32> to vector<4x4x32xf32>
    %40 = vector.shape_cast %39 : vector<4x4x32xf32> to vector<16x32xf32>
    %41 = arith.truncf %40 : vector<16x32xf32> to vector<16x32xbf16>
    %c0_14 = arith.constant 0 : index
    %c0_15 = arith.constant 0 : index
    %42 = vector.load %arg5[%c0_14, %c0_15] : memref<32x32xbf16, #tpu.memory_space<vmem>>, vector<32x32xbf16>
    %cst_16 = arith.constant dense<0.000000e+00> : vector<16x32xf32>
    %43 = tpu.matmul %41, %42, %cst_16 {dimension_numbers = #tpu.dot_dimension_numbers<[1], [0], [0], [1], [0, 0, 1, 1], [], []>} : vector<16x32xbf16>, vector<32x32xbf16>, vector<16x32xf32> -> vector<16x32xf32>
    %c0_17 = arith.constant 0 : index
    %c0_18 = arith.constant 0 : index
    %44 = vector.load %arg7[%c0_17, %c0_18] : memref<5x32xf32, #tpu.memory_space<vmem>>, vector<1x32xf32>
    %45 = vector.broadcast %44 : vector<1x32xf32> to vector<16x32xf32>
    %46 = arith.addf %43, %45 : vector<16x32xf32>
    %c1 = arith.constant 1 : index
    %c0_19 = arith.constant 0 : index
    %47 = vector.load %arg7[%c1, %c0_19] : memref<5x32xf32, #tpu.memory_space<vmem>>, vector<1x32xf32>
    %c2 = arith.constant 2 : index
    %c0_20 = arith.constant 0 : index
    %48 = vector.load %arg7[%c2, %c0_20] : memref<5x32xf32, #tpu.memory_space<vmem>>, vector<1x32xf32>
    %cst_21 = arith.constant dense<0.000000e+00> : vector<16xf32>
    %49 = vector.multi_reduction <add>, %46, %cst_21 [1] : vector<16x32xf32> to vector<16xf32>
    %50 = vector.shape_cast %49 : vector<16xf32> to vector<16x1xf32>
    %cst_22 = arith.constant 3.200000e+01 : f32
    %51 = vector.broadcast %cst_22 : f32 to vector<16x1xf32>
    %52 = arith.divf %50, %51 : vector<16x1xf32>
    %53 = vector.broadcast %52 : vector<16x1xf32> to vector<16x32xf32>
    %54 = arith.subf %46, %53 : vector<16x32xf32>
    %55 = arith.mulf %54, %54 : vector<16x32xf32>
    %cst_23 = arith.constant dense<0.000000e+00> : vector<16xf32>
    %56 = vector.multi_reduction <add>, %55, %cst_23 [1] : vector<16x32xf32> to vector<16xf32>
    %57 = vector.shape_cast %56 : vector<16xf32> to vector<16x1xf32>
    %cst_24 = arith.constant 3.200000e+01 : f32
    %58 = vector.broadcast %cst_24 : f32 to vector<16x1xf32>
    %59 = arith.divf %57, %58 : vector<16x1xf32>
    %60 = vector.broadcast %52 : vector<16x1xf32> to vector<16x32xf32>
    %61 = arith.subf %46, %60 : vector<16x32xf32>
    %cst_25 = arith.constant 9.99999974E-6 : f32
    %62 = vector.broadcast %cst_25 : f32 to vector<16x1xf32>
    %63 = arith.addf %59, %62 : vector<16x1xf32>
    %64 = math.rsqrt %63 : vector<16x1xf32>
    %65 = vector.broadcast %64 : vector<16x1xf32> to vector<16x32xf32>
    %66 = arith.mulf %61, %65 : vector<16x32xf32>
    %67 = vector.broadcast %47 : vector<1x32xf32> to vector<16x32xf32>
    %68 = arith.mulf %66, %67 : vector<16x32xf32>
    %69 = vector.broadcast %48 : vector<1x32xf32> to vector<16x32xf32>
    %70 = arith.addf %68, %69 : vector<16x32xf32>
    %71 = arith.addf %3, %70 : vector<16x32xf32>
    %c3 = arith.constant 3 : index
    %c0_26 = arith.constant 0 : index
    %72 = vector.load %arg7[%c3, %c0_26] : memref<5x32xf32, #tpu.memory_space<vmem>>, vector<1x32xf32>
    %c4 = arith.constant 4 : index
    %c0_27 = arith.constant 0 : index
    %73 = vector.load %arg7[%c4, %c0_27] : memref<5x32xf32, #tpu.memory_space<vmem>>, vector<1x32xf32>
    %cst_28 = arith.constant dense<0.000000e+00> : vector<16xf32>
    %74 = vector.multi_reduction <add>, %71, %cst_28 [1] : vector<16x32xf32> to vector<16xf32>
    %75 = vector.shape_cast %74 : vector<16xf32> to vector<16x1xf32>
    %cst_29 = arith.constant 3.200000e+01 : f32
    %76 = vector.broadcast %cst_29 : f32 to vector<16x1xf32>
    %77 = arith.divf %75, %76 : vector<16x1xf32>
    %78 = vector.broadcast %77 : vector<16x1xf32> to vector<16x32xf32>
    %79 = arith.subf %71, %78 : vector<16x32xf32>
    %80 = arith.mulf %79, %79 : vector<16x32xf32>
    %cst_30 = arith.constant dense<0.000000e+00> : vector<16xf32>
    %81 = vector.multi_reduction <add>, %80, %cst_30 [1] : vector<16x32xf32> to vector<16xf32>
    %82 = vector.shape_cast %81 : vector<16xf32> to vector<16x1xf32>
    %cst_31 = arith.constant 3.200000e+01 : f32
    %83 = vector.broadcast %cst_31 : f32 to vector<16x1xf32>
    %84 = arith.divf %82, %83 : vector<16x1xf32>
    %85 = vector.broadcast %77 : vector<16x1xf32> to vector<16x32xf32>
    %86 = arith.subf %71, %85 : vector<16x32xf32>
    %cst_32 = arith.constant 9.99999974E-6 : f32
    %87 = vector.broadcast %cst_32 : f32 to vector<16x1xf32>
    %88 = arith.addf %84, %87 : vector<16x1xf32>
    %89 = math.rsqrt %88 : vector<16x1xf32>
    %90 = vector.broadcast %89 : vector<16x1xf32> to vector<16x32xf32>
    %91 = arith.mulf %86, %90 : vector<16x32xf32>
    %92 = vector.broadcast %72 : vector<1x32xf32> to vector<16x32xf32>
    %93 = arith.mulf %91, %92 : vector<16x32xf32>
    %94 = vector.broadcast %73 : vector<1x32xf32> to vector<16x32xf32>
    %95 = arith.addf %93, %94 : vector<16x32xf32>
    %96 = arith.truncf %95 : vector<16x32xf32> to vector<16x32xbf16>
    %c0_33 = arith.constant 0 : index
    %c0_34 = arith.constant 0 : index
    %97 = vector.load %arg8[%c0_33, %c0_34] : memref<32x64xbf16, #tpu.memory_space<vmem>>, vector<32x64xbf16>
    %cst_35 = arith.constant dense<0.000000e+00> : vector<16x64xf32>
    %98 = tpu.matmul %96, %97, %cst_35 {dimension_numbers = #tpu.dot_dimension_numbers<[1], [0], [0], [1], [0, 0, 1, 1], [], []>} : vector<16x32xbf16>, vector<32x64xbf16>, vector<16x64xf32> -> vector<16x64xf32>
    %c0_36 = arith.constant 0 : index
    %c0_37 = arith.constant 0 : index
    %99 = vector.load %arg9[%c0_36, %c0_37] : memref<1x64xf32, #tpu.memory_space<vmem>>, vector<1x64xf32>
    %100 = vector.broadcast %99 : vector<1x64xf32> to vector<16x64xf32>
    %101 = arith.addf %98, %100 : vector<16x64xf32>
    %cst_38 = arith.constant 5.000000e-01 : f32
    %102 = vector.broadcast %cst_38 : f32 to vector<16x64xf32>
    %103 = arith.mulf %102, %101 : vector<16x64xf32>
    %cst_39 = arith.constant 0.707106769 : f32
    %104 = vector.broadcast %cst_39 : f32 to vector<16x64xf32>
    %105 = arith.mulf %101, %104 : vector<16x64xf32>
    %106 = math.erf %105 : vector<16x64xf32>
    %cst_40 = arith.constant 1.000000e+00 : f32
    %107 = vector.broadcast %cst_40 : f32 to vector<16x64xf32>
    %108 = arith.addf %107, %106 : vector<16x64xf32>
    %109 = arith.mulf %103, %108 : vector<16x64xf32>
    %110 = arith.truncf %109 : vector<16x64xf32> to vector<16x64xbf16>
    %c0_41 = arith.constant 0 : index
    %c0_42 = arith.constant 0 : index
    %111 = vector.load %arg10[%c0_41, %c0_42] : memref<64x512xbf16, #tpu.memory_space<vmem>>, vector<64x512xbf16>
    %cst_43 = arith.constant dense<0.000000e+00> : vector<16x512xf32>
    %112 = tpu.matmul %110, %111, %cst_43 {dimension_numbers = #tpu.dot_dimension_numbers<[1], [0], [0], [1], [0, 0, 1, 1], [], []>} : vector<16x64xbf16>, vector<64x512xbf16>, vector<16x512xf32> -> vector<16x512xf32>
    %c0_44 = arith.constant 0 : index
    %c0_45 = arith.constant 0 : index
    %113 = vector.load %arg11[%c0_44, %c0_45] : memref<1x512xf32, #tpu.memory_space<vmem>>, vector<1x512xf32>
    %114 = vector.broadcast %113 : vector<1x512xf32> to vector<16x512xf32>
    %115 = arith.addf %112, %114 : vector<16x512xf32>
    %c0_46 = arith.constant 0 : index
    %c0_47 = arith.constant 0 : index
    %116 = vector.load %arg1[%c0_46, %c0_47] : memref<16x512xf32, #tpu.memory_space<vmem>>, vector<16x512xf32>
    %117 = arith.addf %116, %115 : vector<16x512xf32>
    %c0_48 = arith.constant 0 : index
    %c0_49 = arith.constant 0 : index
    %118 = vector.load %arg12[%c0_48, %c0_49] : memref<16x512xf32, #tpu.memory_space<vmem>>, vector<16x512xf32>
    tpu.vector_store %arg12[%c0_48, %c0_49], %117 {strides = array<i32>} : memref<16x512xf32, #tpu.memory_space<vmem>>, vector<16x512xf32>,
    return
  }
  func.func @transform_0(%arg0: i32) -> (i32, i32) {
    %c0_i32 = arith.constant 0 : i32
    %c0_i32_0 = arith.constant 0 : i32
    return %arg0, %c0_i32 : i32, i32
  }
  func.func @transform_1(%arg0: i32) -> (i32, i32) {
    %c0_i32 = arith.constant 0 : i32
    %c0_i32_0 = arith.constant 0 : i32
    %c0_i32_1 = arith.constant 0 : i32
    return %c0_i32, %c0_i32_0 : i32, i32
  }
  func.func @transform_2(%arg0: i32) -> (i32, i32) {
    %c0_i32 = arith.constant 0 : i32
    %c0_i32_0 = arith.constant 0 : i32
    %c0_i32_1 = arith.constant 0 : i32
    return %c0_i32, %c0_i32_0 : i32, i32
  }
  func.func @transform_3(%arg0: i32) -> (i32, i32) {
    %c0_i32 = arith.constant 0 : i32
    %c0_i32_0 = arith.constant 0 : i32
    %c0_i32_1 = arith.constant 0 : i32
    return %c0_i32, %c0_i32_0 : i32, i32
  }
  func.func @transform_4(%arg0: i32) -> (i32, i32) {
    %c0_i32 = arith.constant 0 : i32
    %c0_i32_0 = arith.constant 0 : i32
    %c0_i32_1 = arith.constant 0 : i32
    return %c0_i32, %c0_i32_0 : i32, i32
  }
  func.func @transform_5(%arg0: i32) -> (i32, i32) {
    %c0_i32 = arith.constant 0 : i32
    %c0_i32_0 = arith.constant 0 : i32
    %c0_i32_1 = arith.constant 0 : i32
    return %c0_i32, %c0_i32_0 : i32, i32
  }
  func.func @transform_6(%arg0: i32) -> (i32, i32) {
    %c0_i32 = arith.constant 0 : i32
    %c0_i32_0 = arith.constant 0 : i32
    %c0_i32_1 = arith.constant 0 : i32
    return %c0_i32, %c0_i32_0 : i32, i32
  }
  func.func @transform_7(%arg0: i32) -> (i32, i32) {
    %c0_i32 = arith.constant 0 : i32
    %c0_i32_0 = arith.constant 0 : i32
    %c0_i32_1 = arith.constant 0 : i32
    return %c0_i32, %c0_i32_0 : i32, i32
  }
  func.func @transform_8(%arg0: i32) -> (i32, i32) {
    %c0_i32 = arith.constant 0 : i32
    %c0_i32_0 = arith.constant 0 : i32
    %c0_i32_1 = arith.constant 0 : i32
    return %c0_i32, %c0_i32_0 : i32, i32
  }
  func.func @transform_9(%arg0: i32) -> (i32, i32) {
    %c0_i32 = arith.constant 0 : i32
    %c0_i32_0 = arith.constant 0 : i32
    %c0_i32_1 = arith.constant 0 : i32
    return %c0_i32, %c0_i32_0 : i32, i32
  }
  func.func @transform_10(%arg0: i32) -> (i32, i32) {
    %c0_i32 = arith.constant 0 : i32
    %c0_i32_0 = arith.constant 0 : i32
    %c0_i32_1 = arith.constant 0 : i32
    return %c0_i32, %c0_i32_0 : i32, i32
  }
  func.func @transform_11(%arg0: i32) -> (i32, i32) {
    %c0_i32 = arith.constant 0 : i32
    %c0_i32_0 = arith.constant 0 : i32
    return %arg0, %c0_i32 : i32, i32
  }
}

</mosaic_0001>

<bundles_post_ra>
// kernel: tpu_custom_call.1
= control target key start
LH: loop header
LB: loop body
LE: loop exit
PB: predicated region body
PF: predicated region fallthrough
CT: control target
= control target key end

     0   :  { %16 = vsyncpa [#allocation3], 0  ;;  %s3366_s0 = inlined_call_operand.vmem [shape: f32[32,512], index: 0, kind: input, shape index: {}]   ;;  %s3367_s1 = inlined_call_operand.vmem [shape: bf16[512,32], index: 1, kind: input, shape index: {}]   ;;  %s3368_s2 = inlined_call_operand.vmem [shape: bf16[32,96], index: 2, kind: input, shape index: {}]   ;;  %s3369_s3 = inlined_call_operand.vmem [shape: f32[1,96], index: 3, kind: input, shape index: {}]   ;;  %s3370_s4 = inlined_call_operand.vmem [shape: bf16[32,32], index: 4, kind: input, shape index: {}]   ;;  %s3371_s5 = inlined_call_operand.vmem [shape: bf16[32,32], index: 5, kind: input, shape index: {}]   ;;  %s3372_s6 = inlined_call_operand.vmem [shape: f32[5,32], index: 6, kind: input, shape index: {}]   ;;  %s3373_s7 = inlined_call_operand.vmem [shape: bf16[32,64], index: 7, kind: input, shape index: {}]   ;;  %s3374_s8 = inlined_call_operand.vmem [shape: f32[1,64], index: 8, kind: input, shape index: {}]   ;;  %s3375_s9 = inlined_call_operand.vmem [shape: bf16[64,512], index: 9, kind: input, shape index: {}]   ;;  %s3376_s10 = inlined_call_operand.vmem [shape: f32[1,512], index: 10, kind: input, shape index: {}]   ;;  %s3377_s11 = inlined_call_operand.hbm [shape: f32[32,512], index: 11, kind: output, shape index: {}]  }
   0x1   :  { %18 = vsyncpa [#allocation3 + $0x1], 0  ;;  %s2727_s17 = smov 0   ;;  %s2729_s18 = smov 0  }
   0x2   :  { %s2731_s19 = smov 0   ;;  %s2733_s20 = smov 0  }
   0x3 LB: > { %3379 = sst [smem:[#allocation5_spill]] %s2652_s19  ;;  %s2748_s21 = sadd.s32 4294967295, %s2656_s20   ;;  %s2656_s20 = sphi %s2733_s20, %s3387_s20   ;;  %s2652_s19 = sphi %s2731_s19, %s3384_s19   ;;  %s2648_s18 = sphi %s2729_s18, %s3386_s18   ;;  %s2644_s17 = sphi %s2727_s17, %s3385_s17  }
   0x4   : > { %s2215_s22 = sadd.s32 4294967294, %s2656_s20   ;;  %s2752_s23 = sadd.s32 1, %s2656_s20  }
   0x5   : > { %s267_s24 = sadd.s32 1, %s2652_s19  ;;  %s264_s25 = ssub.s32 %s2656_s20, %s2752_s23 }
   0x6   : > { %p277_p0 = scmp.ne.s32.totalorder %s2652_s19, %s2648_s18  ;;  %p265_p1 = scmp.eq.s32.totalorder %s264_s25, 0 }
   0x7   : > { %p278_p2 = scmp.eq.s32.totalorder %s2748_s21, 1  ;;  %p283_p3 = scmp.ne.s32.totalorder %s2648_s18, %s2644_s17 }
   0x8   : > { %p284_p4 = scmp.eq.s32.totalorder %s2215_s22, 1  ;;  %p2218_p7 = scmp.ge.s32.totalorder %s2656_s20, 1 }
   0x9   : > { %s2763_s26 = scalar_select %p265_p1, %s2652_s19, %s267_s24  }
   0xa   : > { %p2765_p5 = por %p278_p2, %p277_p0  ;;  %p2769_p6 = por %p284_p4, %p283_p3 }
   0xb   : > { %3380 = sst [smem:[#allocation6_spill]] %s2763_s26  ;;  %p342_p8 = scmp.lt.s32.totalorder %s2656_s20, 3 }
   0xd   : > { %p343_p9 = pnand %p2218_p7, %p342_p8 }
   0xe   : > { %v2446_v0 = vld [vmem:[%s3367_s1 + $0x40] sm:$0xff] (!%p343_p9)   ;;  %v2450_v4 = vld [vmem:[%s3367_s1 + $0x48] sm:$0xff] (!%p343_p9)   ;;  %v2454_v8 = vld [vmem:[%s3367_s1 + $0x50] sm:$0xff] (!%p343_p9)   ;;  %s2220_s12 = sshll.u32 (!%p343_p9), %s2748_s21, 1  ;;  %v2658_v45 = vmov (!%p343_p9), 0.0   ;;  %vm2659_vm0 = vmmov (!%p343_p9), 0  }
   0xf   : > { %346 = sbr.rel (%p343_p9) target bundleno = 2291 (0x8f3), region = 64  ;;  %v2447_v1 = vld [vmem:[%s3367_s1 + $0xc0] sm:$0xff] (!%p343_p9)   ;;  %2304 = vmatprep.subr.bf16.mxu0 (!%p343_p9), %v2446_v0  ;;  %v2451_v5 = vld [vmem:[%s3367_s1 + $0xc8] sm:$0xff] (!%p343_p9)   ;;  %v2455_v9 = vld [vmem:[%s3367_s1 + $0xd0] sm:$0xff] (!%p343_p9)   ;;  %p384_p10 = scmp.lt.s32.totalorder (!%p343_p9), %s2220_s12, 3  ;;  %vm766_vm1 = vcmask (!%p343_p9), 261120  }
  0x10   : > { %v2448_v2 = vld [vmem:[%s3367_s1] sm:$0xff] (!%p343_p9)   ;;  %2326 = vmatprep.subr.bf16.mxu1 (!%p343_p9), %v2447_v1  ;;  %v2452_v6 = vld [vmem:[%s3367_s1 + $0x8] sm:$0xff] (!%p343_p9)   ;;  %v2456_v10 = vld [vmem:[%s3367_s1 + $0x10] sm:$0xff] (!%p343_p9)   ;;  %s2660_s24 = smov (!%p343_p9), 96   ;;  %s2661_s19 = smov (!%p343_p9), 64   ;;  %vm1172_vm2 = vcmask (!%p343_p9), 257024  }
  0x11   : > { %v2449_v3 = vld [vmem:[%s3367_s1 + $0x80] sm:$0xff] (!%p343_p9)   ;;  %2305 = vmatpush3.bf16.msra.mxu0 (!%p343_p9), %v2448_v2  ;;  %v2453_v7 = vld [vmem:[%s3367_s1 + $0x88] sm:$0xff] (!%p343_p9)   ;;  %v2457_v11 = vld [vmem:[%s3367_s1 + $0x90] sm:$0xff] (!%p343_p9)   ;;  %vm1674_vm3 = vcmask (!%p343_p9), 1041409   ;;  %vm1676_vm4 = vcmask (!%p343_p9), 1042434   ;;  %vm1678_vm5 = vcmask (!%p343_p9), 1043459  }
  0x12   : > { %2327 = vmatpush3.bf16.msra.mxu1 (!%p343_p9), %v2449_v3  ;;  %2306 = vmatprep.subr.bf16.mxu0 (!%p343_p9), %v2450_v4  ;;  %v2458_v12 = vld [vmem:[%s3367_s1 + $0x58] sm:$0xff] (!%p343_p9)   ;;  %v2462_v16 = vld [vmem:[%s3367_s1 + $0x60] sm:$0xff] (!%p343_p9)   ;;  %v2466_v20 = vld [vmem:[%s3367_s1 + $0x68] sm:$0xff] (!%p343_p9)   ;;  %vm1680_vm6 = vcmask (!%p343_p9), 1044484   ;;  %vm1682_vm7 = vcmask (!%p343_p9), 1045509   ;;  %vm1684_vm8 = vcmask (!%p343_p9), 1046534  }
  0x13   : > { %2328 = vmatprep.subr.bf16.mxu1 (!%p343_p9), %v2451_v5  ;;  %v2459_v13 = vld [vmem:[%s3367_s1 + $0xd8] sm:$0xff] (!%p343_p9)   ;;  %v2463_v17 = vld [vmem:[%s3367_s1 + $0xe0] sm:$0xff] (!%p343_p9)   ;;  %v2467_v21 = vld [vmem:[%s3367_s1 + $0xe8] sm:$0xff] (!%p343_p9)   ;;  %vm1686_vm9 = vcmask (!%p343_p9), 1047559   ;;  %vm2032_vm10 = vcmask (!%p343_p9), 523264   ;;  %s2303_s25 = sshll.u32 (!%p343_p9), %s2748_s21, 10 }
  0x14   : > { %v2460_v14 = vld [vmem:[%s3367_s1 + $0x18] sm:$0xff] (!%p343_p9)   ;;  %v2464_v18 = vld [vmem:[%s3367_s1 + $0x20] sm:$0xff] (!%p343_p9)   ;;  %v2468_v22 = vld [vmem:[%s3367_s1 + $0x28] sm:$0xff] (!%p343_p9)   ;;  %s3311_s14 = scalar_lea.hbm (!%p343_p9), %s3377_s11, %s2303_s25  ;;  %s2664_s16 = smov (!%p343_p9), [#allocation2]  }
  0x15   : > { %2307 = vmatpush3.bf16.msra.mxu0 (!%p343_p9), %v2452_v6  ;;  %v2461_v15 = vld [vmem:[%s3367_s1 + $0x98] sm:$0xff] (!%p343_p9)   ;;  %v2465_v19 = vld [vmem:[%s3367_s1 + $0xa0] sm:$0xff] (!%p343_p9)   ;;  %v2469_v23 = vld [vmem:[%s3367_s1 + $0xa8] sm:$0xff] (!%p343_p9)  }
  0x16   : > { %2329 = vmatpush3.bf16.msra.mxu1 %v2453_v7  ;;  %2308 = vmatprep.subr.bf16.mxu0 %v2454_v8  ;;  %s3389_s12 = smov (!%p384_p10, %s2220_s12), 3  ;;  %v2470_v24 = vld [vmem:[%s3367_s1 + $0x70] sm:$0xff]   ;;  %v2474_v28 = vld [vmem:[%s3367_s1 + $0x78] sm:$0xff]   ;;  %v2478_v44 = vld [vmem:[%s3368_s2] sm:$0xff]  }
  0x17   : > { %2330 = vmatprep.subr.bf16.mxu1 %v2455_v9  ;;  %v2471_v25 = vld [vmem:[%s3367_s1 + $0xf0] sm:$0xff]   ;;  %s2301_s22 = sshll.u32 %s3389_s12, 5  ;;  %v2475_v29 = vld [vmem:[%s3367_s1 + $0xf8] sm:$0xff]   ;;  %v2479_v46 = vld [vmem:[%s3368_s2 + $0x8] sm:$0xff]   ;;  %v2662_v9 = vmov 1966171168  }
  0x18   : > { %v2472_v26 = vld [vmem:[%s3367_s1 + $0x30] sm:$0xff]   ;;  %s2869_s15 = scalar_lea.vmem %s3366_s0, %s2301_s22  ;;  %v2476_v30 = vld [vmem:[%s3367_s1 + $0x38] sm:$0xff]   ;;  %v2480_v62 = vld [vmem:[%s3371_s5] sm:$0xff]  }
  0x19   : > { %2309 = vmatpush3.bf16.msra.mxu0 %v2456_v10  ;;  %v2473_v27 = vld [vmem:[%s3367_s1 + $0xb0] sm:$0xff]   ;;  %v2477_v31 = vld [vmem:[%s3367_s1 + $0xb8] sm:$0xff]   ;;  %v393_v32 = vld [vmem:[%s2869_s15 + $0x8] sm:$0xff]  ;;  %v815_v10 = vunpack.c.l.s4 %v2662_v9 }
  0x1a   : > { %2331 = vmatpush3.bf16.msra.mxu1 %v2457_v11  ;;  %2310 = vmatprep.subr.bf16.mxu0 %v2458_v12  ;;  %v397_v33 = vld [vmem:[%s2869_s15 + $0x28] sm:$0xff]  ;;  %v395_v34 = vld [vmem:[%s2869_s15 + $0x18] sm:$0xff]  ;;  %v392_v37 = vld [vmem:[%s2869_s15] sm:$0xff]  ;;  %v817_v11 = vlaneseq }
  0x1b   : > { %2332 = vmatprep.subr.bf16.mxu1 %v2459_v13  ;;  %v401_v35 = vpack.c.bf16 %v397_v33, %v393_v32  ;;  %v399_v36 = vld [vmem:[%s2869_s15 + $0x38] sm:$0xff]  ;;  %v396_v38 = vld [vmem:[%s2869_s15 + $0x20] sm:$0xff]  ;;  %v394_v41 = vld [vmem:[%s2869_s15 + $0x10] sm:$0xff]  ;;  %v816_v12 = vunpack.c.0.s8 %v815_v10 }
  0x1c   : > { %v403_v39 = vpack.c.bf16 %v399_v36, %v395_v34  ;;  %v400_v40 = vpack.c.bf16 %v396_v38, %v392_v37  ;;  %v398_v42 = vld [vmem:[%s2869_s15 + $0x30] sm:$0xff]  ;;  %v2481_v63 = vld [vmem:[%s3371_s5 + $0x8] sm:$0xff]   ;;  %v2255_v0 = vld [vmem:[%s3369_s3] ss:$0 sm:$0xff]  ;;  %v2914_v13 = vshrl.u32 %v817_v11, 7 }
  0x1d   : > { %2311 = vmatpush3.bf16.msra.mxu0 %v2460_v14  ;;  %692 = vmatprep.mubr.bf16.mxu0 %v401_v35  ;;  %v402_v43 = vpack.c.bf16 %v398_v42, %v394_v41 }
  0x1e   : > { %2333 = vmatpush3.bf16.msra.mxu1 %v2461_v15  ;;  %2312 = vmatprep.subr.bf16.mxu0 %v2462_v16  ;;  %v819_v14 = vsub.s32 %v816_v12, %v2914_v13 }
  0x1f   : > { %2334 = vmatprep.subr.bf16.mxu1 %v2463_v17  ;;  %733 = vmatprep.mubr.bf16.mxu1 %v403_v39 }
  0x21   : > { %2313 = vmatpush3.bf16.msra.mxu0 %v2464_v18 }
  0x22   : > { %2335 = vmatpush3.bf16.msra.mxu1 %v2465_v19  ;;  %2314 = vmatprep.subr.bf16.mxu0 %v2466_v20 }
  0x23   : > { %2336 = vmatprep.subr.bf16.mxu1 %v2467_v21 }
  0x25   : > { %2315 = vmatpush3.bf16.msra.mxu0 %v2468_v22 }
  0x26   : > { %2337 = vmatpush3.bf16.msra.mxu1 %v2469_v23  ;;  %2316 = vmatprep.subr.bf16.mxu0 %v2470_v24 }
  0x27   : > { %2338 = vmatprep.subr.bf16.mxu1 %v2471_v25  ;;  %v2918_v25 = vsub.s32 0, %v2914_v13 }
  0x29   : > { %2317 = vmatpush3.bf16.msra.mxu0 %v2472_v26 }
  0x2a   : > { %2339 = vmatpush3.bf16.msra.mxu1 %v2473_v27  ;;  %2318 = vmatprep.subr.bf16.mxu0 %v2474_v28 }
  0x2b   : > { %2340 = vmatprep.subr.bf16.mxu1 %v2475_v29 }
  0x2d   : > { %2319 = vmatpush3.bf16.msra.mxu0 %v2476_v30 }
  0x2e   : > { %2341 = vmatpush3.bf16.msra.mxu1 %v2477_v31  ;;  %2383 = vmatprep.subr.bf16.mxu0 %v2658_v45 }
  0x2f   : > { %2363 = vmatprep.subr.bf16.mxu1 %v2658_v45 }
  0x30   : > { %693 = vmatmul.mubr.bf16.vlgmr.msra.gmra.mrb[0].mxu0 %v400_v40 }
  0x31   : > { %734 = vmatmul.mubr.bf16.vlgmr.msra.gmra.mrb[0].mxu1 %v402_v43  ;;  %2387 = vmatprep.mubr.msk.bf16.mxu0 %vm2659_vm0, %v2658_v45 }
  0x32   : > { %2364 = vmatpush3.bf16.msra.mxu1 %v2478_v44  ;;  %2367 = vmatprep.mubr.msk.bf16.mxu1 %vm2659_vm0, %v2658_v45 }
  0x33   : > { %2365 = vmatprep.subr.bf16.mxu1 %v2658_v45 }
  0x36   : > { %2366 = vmatpush3.bf16.msra.mxu1 %v2479_v46 }
  0x37   : > { %2371 = vmatprep.subr.bf16.mxu1 %v2480_v62 }
 0x103   : > { %v2320_v47 = vpop.f32.mrb[0].mxu0 }
 0x104   : > { %v2342_v48 = vpop.f32.mrb[0].mxu1  ;;  %v2321_v49 = vpop.f32.mrb[1].mxu0 }
 0x105   : > { %v2322_v50 = vadd.f32 %v2321_v49, %v2320_v47  ;;  %v2343_v51 = vpop.f32.mrb[1].mxu1  ;;  %v2323_v52 = vpop.f32.mrb[2].mxu0 }
 0x106   : > { %v2344_v53 = vadd.f32 %v2343_v51, %v2342_v48  ;;  %v2345_v54 = vpop.f32.mrb[2].mxu1  ;;  %v2324_v55 = vpop.f32.mrb[3].mxu0 }
 0x107   : > { %v2325_v56 = vadd.f32 %v2324_v55, %v2323_v52  ;;  %v2346_v57 = vpop.f32.mrb[3].mxu1 }
 0x108   : > { %v2898_v58 = vadd.f32 %v2344_v53, %v2322_v50  ;;  %v2347_v59 = vadd.f32 %v2346_v57, %v2345_v54 }
 0x10a   : > { %v2900_v60 = vadd.f32 %v2347_v59, %v2325_v56 }
 0x10c   : > { %v742_v61 = vpack.c.bf16 %v2900_v60, %v2898_v58 }
 0x10e   : > { %2368 = vmatmul.mubr.msk.bf16.vlgmr.msra.gmra.mrb[4].mxu1 %vm766_vm1, %v742_v61 }
 0x10f   : > { %2372 = vmatpush3.bf16.msra.mxu1 %v2480_v62 }
 0x110   : > { %2373 = vmatprep.subr.bf16.mxu1 %v2481_v63 }
 0x113   : > { %2374 = vmatpush3.bf16.msra.mxu1 %v2481_v63 }
 0x1e1   : > { %v804_v1 = vpop.f32.mrb[4].mxu1 }
 0x1e2   : > { %v805_v2 = vadd.f32 %v2255_v0, %v804_v1  ;;  %v2369_v3 = vpop.f32.mrb[5].mxu1 }
 0x1e3   : > { %v807_v4 = vpop.f32.mrb[6].mxu1 }
 0x1e4   : > { %v808_v5 = vadd.f32 %v2255_v0, %v807_v4  ;;  %991 = vrot.lane.b32.xlu0 %v805_v2, %s2660_s24  ;;  %v2370_v6 = vpop.f32.mrb[7].mxu1  ;;  %v813_v7 = vcombine.high %v805_v2, %v805_v2  ;;  %v820_v15 = vrot.slane %v805_v2, %v819_v14 }
 0x1e6   : > { %995 = vrot.lane.b32.xlu1 %v808_v5, %s2660_s24  ;;  %v862_v8 = vcombine.high %v808_v5, %v808_v5  ;;  %v869_v16 = vrot.slane %v808_v5, %v819_v14  ;;  %v827_v17 = vrot.slane %v813_v7, %v819_v14  ;;  %v828_v18 = vcombine.high %v820_v15, %v820_v15 }
 0x1e7   : > { %v836_v21 = vrot.slane %v820_v15, %v819_v14 }
 0x1e8   : > { %993 = vrot.lane.b32.xlu0 %v813_v7, %s2660_s24  ;;  %v877_v19 = vcombine.high %v869_v16, %v869_v16  ;;  %v829_v20 = vcombine.high %v827_v17, %v827_v17  ;;  %v850_v22 = vrot.slane %v828_v18, %v819_v14  ;;  %v876_v23 = vrot.slane %v862_v8, %v819_v14 }
 0x1e9   : > { %v885_v24 = vrot.slane %v869_v16, %v819_v14  ;;  %v843_v27 = vrot.slane %v827_v17, %v819_v14  ;;  %v858_v29 = vcombine.high %v836_v21, %v836_v21  ;;  %v914_v33 = vrot.slane %v836_v21, %v2918_v25 }
 0x1ea   : > { %997 = vrot.lane.b32.xlu1 %v862_v8, %s2660_s24  ;;  %v899_v26 = vrot.slane %v877_v19, %v819_v14  ;;  %v857_v28 = vrot.slane %v829_v20, %v819_v14  ;;  %v860_v30 = vcombine.high %v850_v22, %v850_v22  ;;  %v878_v31 = vcombine.high %v876_v23, %v876_v23  ;;  %s2598_s24 = sshll.u32 %s2664_s16, 4  ;;  %s2599_s24 = int_to_ptr.vmem [resolvable:$false] %s2598_s24 }
 0x1eb   : > { %v907_v32 = vcombine.high %v885_v24, %v885_v24  ;;  %v918_v34 = vrot.slane %v850_v22, %v2918_v25  ;;  %v859_v36 = vcombine.high %v843_v27, %v843_v27  ;;  %v922_v38 = vrot.slane %v858_v29, %v2918_v25 }
 0x1ec   : > { %1477 = vrot.lane.b32.xlu0 %v805_v2, %s2661_s19  ;;  %v909_v35 = vcombine.high %v899_v26, %v899_v26  ;;  %v861_v37 = vcombine.high %v857_v28, %v857_v28  ;;  %v926_v39 = vrot.slane %v860_v30, %v2918_v25  ;;  %v946_v40 = vrot.slane %v885_v24, %v2918_v25 }
 0x1ed   : > { %v950_v41 = vrot.slane %v899_v26, %v2918_v25  ;;  %v954_v43 = vrot.slane %v907_v32, %v2918_v25  ;;  %v930_v44 = vrot.slane %v843_v27, %v2918_v25  ;;  %v892_v46 = vrot.slane %v876_v23, %v819_v14 }
 0x1ee   : > { %1481 = vrot.lane.b32.xlu1 %v808_v5, %s2661_s19  ;;  %v906_v47 = vrot.slane %v878_v31, %v819_v14  ;;  %v958_v53 = vrot.slane %v909_v35, %v2918_v25  ;;  %v934_v54 = vrot.slane %v857_v28, %v2918_v25  ;;  %v938_v55 = vrot.slane %v859_v36, %v2918_v25 }
 0x1ef   : > { %v942_v56 = vrot.slane %v861_v37, %v2918_v25  ;;  %v908_v2 = vcombine.high %v892_v46, %v892_v46  ;;  %v962_v14 = vrot.slane %v892_v46, %v2918_v25 }
 0x1f0   : > { %1479 = vrot.lane.b32.xlu0 %v813_v7, %s2661_s19  ;;  %v910_v3 = vcombine.high %v906_v47, %v906_v47  ;;  %v966_v16 = vrot.slane %v906_v47, %v2918_v25 }
 0x1f1   : > { %v970_v17 = vrot.slane %v908_v2, %v2918_v25 }
 0x1f2   : > { %1483 = vrot.lane.b32.xlu1 %v862_v8, %s2661_s19  ;;  %v974_v18 = vrot.slane %v910_v3, %v2918_v25  ;;  %s380_s19 = sand.u32 1, %s2648_s18  }
 0x1f3   : > { %s2219_s22 = sshll.u32 %s380_s19, 6  ;;  %s3325_s26 = scalar_lea.sflag [#allocation3], %s380_s19 }
 0x1f4   : > { %s3297_s29 = scalar_lea.vmem [#allocation2], %s2219_s22  ;;  %s2600_s22 = scalar_lea.vmem %s2599_s24, 2048 }
 0x1f5   : > { %s2153_s30 = sshll.u32 %s3297_s29, 4  ;;  %s3313_s30 = int_to_ptr.vmem [resolvable:$true] %s2153_s30 }
 0x1f6   : > { %s2594_s12 = scalar_lea.vmem %s3313_s30, 1024  ;;  %p2601_p0 = scmp.lt.s32.totalorder %s3313_s30, %s2599_s24 }
 0x1f7   : > { %p2595_p11 = scmp.ne.s32.totalorder %s3313_s30, %s2594_s12  ;;  %p2602_p1 = scmp.lt.s32.totalorder %s2600_s22, %s2594_s12 }
 0x1f9   : > { %p2596_p12 = pnand %p2595_p11, %p2765_p5  ;;  %p2603_p2 = por %p2602_p1, %p2601_p0 }
 0x1fb   : > { %p2597_p13 = pneg %p2596_p12 }
 0x1fd   : > { %p2604_p3 = pnand %p2603_p2, %p2597_p13 }
 0x256   : > { %v992_v42 = vpop.permute.xlu0 %991 }
 0x257   : > { %v1003_v48 = vmul.f32 %v992_v42, %v914_v33  ;;  %v1004_v49 = vmul.f32 %v992_v42, %v918_v34  ;;  %v1005_v50 = vmul.f32 %v992_v42, %v922_v38  ;;  %v1006_v51 = vmul.f32 %v992_v42, %v926_v39 }
 0x258   : > { %v996_v52 = vpop.permute.xlu1 %995 }
 0x259   : > { %v1035_v57 = vcombine.low %v1003_v48, %v1004_v49  ;;  %v1036_v59 = vcombine.low %v1005_v50, %v1006_v51  ;;  %v1011_v61 = vmul.f32 %v996_v52, %v946_v40  ;;  %v1012_v62 = vmul.f32 %v996_v52, %v950_v41 }
 0x25a   : > { %v1013_v63 = vmul.f32 %v996_v52, %v954_v43  ;;  %v1014_v0 = vmul.f32 %v996_v52, %v958_v53  ;;  %v994_v1 = vpop.permute.xlu0 %993 }
 0x25b   : > { %v1007_v4 = vmul.f32 %v994_v1, %v930_v44  ;;  %v1008_v5 = vmul.f32 %v994_v1, %v934_v54  ;;  %v1009_v6 = vmul.f32 %v994_v1, %v938_v55  ;;  %v1010_v7 = vmul.f32 %v994_v1, %v942_v56 }
 0x25c   : > { %v998_v8 = vpop.permute.xlu1 %997  ;;  %v1051_v9 = vpack.c.bf16 %v1036_v59, %v1035_v57  ;;  %v1039_v10 = vcombine.low %v1011_v61, %v1012_v62  ;;  %v1040_v11 = vcombine.low %v1013_v63, %v1014_v0 }
 0x25d   : > { %v1037_v12 = vcombine.low %v1007_v4, %v1008_v5  ;;  %v1038_v15 = vcombine.low %v1009_v6, %v1010_v7  ;;  %v1015_v19 = vmul.f32 %v998_v8, %v962_v14  ;;  %v1016_v21 = vmul.f32 %v998_v8, %v966_v16 }
 0x25e   : > { %2375 = vmatprep.mubr.msk.bf16.mxu1 %vm766_vm1, %v1051_v9  ;;  %v1017_v22 = vmul.f32 %v998_v8, %v970_v17  ;;  %v1018_v23 = vmul.f32 %v998_v8, %v974_v18  ;;  %v1053_v24 = vpack.c.bf16 %v1040_v11, %v1039_v10 }
 0x25f   : > { %v1052_v20 = vpack.c.bf16 %v1038_v15, %v1037_v12  ;;  %v1041_v26 = vcombine.low %v1015_v19, %v1016_v21 }
 0x260   : > { %v1042_v27 = vcombine.low %v1017_v22, %v1018_v23 }
 0x261   : > { %2376 = vmatmul.mubr.msk.bf16.vlgmr.msra.gmra.mrb[8].mxu1 %vm766_vm1, %v1052_v20 }
 0x262   : > { %2379 = vmatprep.mubr.msk.bf16.mxu1 %vm766_vm1, %v1053_v24  ;;  %v1054_v28 = vpack.c.bf16 %v1042_v27, %v1041_v26 }
 0x269   : > { %2380 = vmatmul.mubr.msk.bf16.gmra.mrb[12].mxu1 %vm766_vm1, %v1054_v28 }
 0x334   : > { %v2940_v29 = vpop.f32.mrb[8].mxu1 }
 0x335   : > { %v2944_v30 = vcombine.high %v2940_v29, %v2940_v29  ;;  %v1201_v31 = vsel %vm1172_vm2, %v2940_v29, -inf  ;;  %v2948_v32 = vpop.f32.mrb[9].mxu1 }
 0x336   : > { %v1202_v33 = vrot.slane %v1201_v31, 4  ;;  %v2952_v34 = vcombine.high %v2948_v32, %v2948_v32  ;;  %v1173_v35 = vsel %vm1172_vm2, %v2948_v32, -inf  ;;  %v2956_v36 = vpop.f32.mrb[10].mxu1 }
 0x337   : > { %v1208_v37 = vsel %vm1172_vm2, %v2944_v30, -inf  ;;  %v1174_v38 = vrot.slane %v1173_v35, 4  ;;  %v2962_v39 = vcombine.high %v2956_v36, %v2956_v36  ;;  %v1215_v40 = vsel %vm1172_vm2, %v2956_v36, -inf  ;;  %v2966_v41 = vpop.f32.mrb[11].mxu1 }
 0x338   : > { %v1203_v42 = vmax.f32 %v1201_v31, %v1202_v33  ;;  %v1209_v43 = vrot.slane %v1208_v37, 4  ;;  %v1180_v44 = vsel %vm1172_vm2, %v2952_v34, -inf  ;;  %v1216_v46 = vrot.slane %v1215_v40, 4 }
 0x339   : > { %v1175_v47 = vmax.f32 %v1173_v35, %v1174_v38  ;;  %v1181_v48 = vrot.slane %v1180_v44, 4  ;;  %v1222_v49 = vsel %vm1172_vm2, %v2962_v39, -inf  ;;  %v2974_v50 = vcombine.high %v2966_v41, %v2966_v41 }
 0x33a   : > { %v1204_v51 = vrot.slane %v1203_v42, 2  ;;  %v1210_v52 = vmax.f32 %v1208_v37, %v1209_v43  ;;  %v1217_v53 = vmax.f32 %v1215_v40, %v1216_v46  ;;  %v1223_v54 = vrot.slane %v1222_v49, 4 }
 0x33b   : > { %v1176_v55 = vrot.slane %v1175_v47, 2  ;;  %v1182_v56 = vmax.f32 %v1180_v44, %v1181_v48  ;;  %v1187_v57 = vsel %vm1172_vm2, %v2966_v41, -inf  ;;  %v1194_v59 = vsel %vm1172_vm2, %v2974_v50, -inf }
 0x33c   : > { %v1205_v61 = vmax.f32 %v1203_v42, %v1204_v51  ;;  %v1211_v62 = vrot.slane %v1210_v52, 2  ;;  %v1218_v63 = vrot.slane %v1217_v53, 2  ;;  %v1224_v0 = vmax.f32 %v1222_v49, %v1223_v54  ;;  %v2980_v1 = vpop.f32.mrb[12].mxu1  ;;  %v2482_v42 = vld [vmem:[%s3370_s4] sm:$0xff]  }
 0x33d   : > { %v1177_v2 = vmax.f32 %v1175_v47, %v1176_v55  ;;  %v1183_v3 = vrot.slane %v1182_v56, 2  ;;  %v1188_v4 = vrot.slane %v1187_v57, 4  ;;  %v1195_v5 = vrot.slane %v1194_v59, 4  ;;  %v2982_v6 = vpop.f32.mrb[13].mxu1  ;;  %2384 = vmatpush3.bf16.msra.mxu0 %v2482_v42 }
 0x33e   : > { %v1206_v7 = vrot.slane %v1205_v61, 1  ;;  %v1212_v8 = vmax.f32 %v1210_v52, %v1211_v62  ;;  %v1219_v9 = vmax.f32 %v1217_v53, %v1218_v63  ;;  %v1225_v10 = vrot.slane %v1224_v0, 2  ;;  %v2984_v11 = vpop.f32.mrb[14].mxu1  ;;  %2385 = vmatprep.subr.bf16.mxu0 %v2658_v45 }
 0x33f   : > { %v1178_v12 = vrot.slane %v1177_v2, 1  ;;  %v1184_v14 = vmax.f32 %v1182_v56, %v1183_v3  ;;  %v1189_v15 = vmax.f32 %v1187_v57, %v1188_v4  ;;  %v1196_v16 = vmax.f32 %v1194_v59, %v1195_v5  ;;  %v2986_v17 = vpop.f32.mrb[15].mxu1 }
 0x340   : > { %v1207_v18 = vmax.f32 %v1205_v61, %v1206_v7  ;;  %v1213_v19 = vrot.slane %v1212_v8, 1  ;;  %v1220_v20 = vrot.slane %v1219_v9, 1  ;;  %v1226_v21 = vmax.f32 %v1224_v0, %v1225_v10 }
 0x341   : > { %v1179_v22 = vmax.f32 %v1177_v2, %v1178_v12  ;;  %v1185_v23 = vrot.slane %v1184_v14, 1  ;;  %v1190_v24 = vrot.slane %v1189_v15, 2  ;;  %v1197_v26 = vrot.slane %v1196_v16, 2 }
 0x342   : > { %v1214_v27 = vmax.f32 %v1212_v8, %v1213_v19  ;;  %v1289_v28 = vsub.f32 %v2940_v29, %v1207_v18  ;;  %v1221_v31 = vmax.f32 %v1219_v9, %v1220_v20  ;;  %v1227_v33 = vrot.slane %v1226_v21, 1 }
 0x343   : > { %v1186_v35 = vmax.f32 %v1184_v14, %v1185_v23  ;;  %v1285_v37 = vsub.f32 %v2948_v32, %v1179_v22  ;;  %v1191_v38 = vmax.f32 %v1189_v15, %v1190_v24  ;;  %v1198_v40 = vmax.f32 %v1196_v16, %v1197_v26  ;;  %v2483_v32 = vld [vmem:[%s3370_s4 + $0x8] sm:$0xff]  }
 0x344   : > { %v1290_v43 = vsub.f32 %v2944_v30, %v1214_v27  ;;  %v1309_v44 = vmul.f32 1.442695, %v1289_v28  ;;  %v1228_v46 = vmax.f32 %v1226_v21, %v1227_v33  ;;  %v1291_v47 = vsub.f32 %v2956_v36, %v1221_v31  ;;  %2386 = vmatpush3.bf16.msra.mxu0 %v2483_v32 }
 0x345   : > { %v1286_v48 = vsub.f32 %v2952_v34, %v1186_v35  ;;  %v1301_v29 = vmul.f32 1.442695, %v1285_v37  ;;  %v1192_v49 = vrot.slane %v1191_v38, 1  ;;  %v1199_v51 = vrot.slane %v1198_v40, 1  ;;  %2391 = vmatprep.subr.bf16.mxu0 %v2658_v45 }
 0x346   : > { %2510 = vpow2.f32 %v1309_v44  ;;  %v1311_v52 = vmul.f32 1.442695, %v1290_v43  ;;  %v1292_v53 = vsub.f32 %v2962_v39, %v1228_v46  ;;  %v1313_v54 = vmul.f32 1.442695, %v1291_v47 }
 0x347   : > { %2512 = vpow2.f32 %v1301_v29  ;;  %v1303_v30 = vmul.f32 1.442695, %v1286_v48  ;;  %v1193_v36 = vmax.f32 %v1191_v38, %v1192_v49  ;;  %v1200_v55 = vmax.f32 %v1198_v40, %v1199_v51 }
 0x348   : > { %2514 = vpow2.f32 %v1311_v52  ;;  %v1315_v34 = vmul.f32 1.442695, %v1292_v53  ;;  %v3003_v56 = vcombine.high %v2980_v1, %v2980_v1  ;;  %v1257_v57 = vsel %vm1172_vm2, %v2980_v1, -inf }
 0x349   : > { %2516 = vpow2.f32 %v1303_v30  ;;  %v1287_v59 = vsub.f32 %v2966_v41, %v1193_v36  ;;  %v1288_v39 = vsub.f32 %v2974_v50, %v1200_v55  ;;  %v1258_v61 = vrot.slane %v1257_v57, 4 }
 0x34a   : > { %2518 = vpow2.f32 %v1313_v54  ;;  %v1264_v62 = vsel %vm1172_vm2, %v3003_v56, -inf  ;;  %v3013_v63 = vcombine.high %v2982_v6, %v2982_v6  ;;  %v1229_v0 = vsel %vm1172_vm2, %v2982_v6, -inf }
 0x34b   : > { %2520 = vpow2.f32 %v1315_v34  ;;  %v1305_v2 = vmul.f32 1.442695, %v1287_v59  ;;  %v1307_v41 = vmul.f32 1.442695, %v1288_v39  ;;  %v1259_v3 = vmax.f32 %v1257_v57, %v1258_v61 }
 0x34c   : > { %v1265_v50 = vrot.slane %v1264_v62, 4  ;;  %v1230_v4 = vrot.slane %v1229_v0, 4  ;;  %v1236_v5 = vsel %vm1172_vm2, %v3013_v63, -inf  ;;  %v3022_v7 = vcombine.high %v2984_v11, %v2984_v11 }
 0x34d   : > { %2522 = vpow2.f32 %v1305_v2  ;;  %v1260_v8 = vrot.slane %v1259_v3, 2  ;;  %v1237_v9 = vrot.slane %v1236_v5, 4  ;;  %v1271_v10 = vsel %vm1172_vm2, %v2984_v11, -inf }
 0x34e   : > { %2524 = vpow2.f32 %v1307_v41  ;;  %v1266_v12 = vmax.f32 %v1264_v62, %v1265_v50  ;;  %v1231_v14 = vmax.f32 %v1229_v0, %v1230_v4  ;;  %v1272_v15 = vrot.slane %v1271_v10, 4 }
 0x34f   : > { %v1261_v16 = vmax.f32 %v1259_v3, %v1260_v8  ;;  %v1238_v18 = vmax.f32 %v1236_v5, %v1237_v9  ;;  %v3028_v19 = vsel %vm1172_vm2, %v3022_v7, -inf }
 0x350   : > { %v3030_v20 = vpop.eup %2510  ;;  %v1267_v21 = vrot.slane %v1266_v12, 2  ;;  %v1232_v22 = vrot.slane %v1231_v14, 2  ;;  %v3032_v23 = vmax.f32 %v1271_v10, %v1272_v15  ;;  %v1279_v31 = vrot.slane %v3028_v19, 4 }
 0x351   : > { %v3034_v24 = vpop.eup %2512  ;;  %v1361_v26 = vsel %vm1172_vm2, %v3030_v20, 0.0  ;;  %v1262_v27 = vrot.slane %v1261_v16, 1  ;;  %v1239_v28 = vrot.slane %v1238_v18, 2 }
 0x352   : > { %v3039_v33 = vpop.eup %2514  ;;  %v1362_v35 = vrot.slane %v1361_v26, 4  ;;  %v1333_v37 = vsel %vm1172_vm2, %v3034_v24, 0.0  ;;  %v1268_v38 = vmax.f32 %v1266_v12, %v1267_v21  ;;  %v3043_v40 = vmax.f32 %v1231_v14, %v1232_v22 }
 0x353   : > { %v3045_v42 = vpop.eup %2516  ;;  %v1368_v43 = vsel %vm1172_vm2, %v3039_v33, 0.0  ;;  %v1334_v44 = vrot.slane %v1333_v37, 4  ;;  %v1263_v46 = vmax.f32 %v1261_v16, %v1262_v27  ;;  %v3049_v47 = vmax.f32 %v1238_v18, %v1239_v28 }
 0x354   : > { %v3051_v48 = vpop.eup %2518  ;;  %v1363_v29 = vadd.f32 %v1362_v35, %v1361_v26  ;;  %v1369_v49 = vrot.slane %v1368_v43, 4  ;;  %v1340_v51 = vsel %vm1172_vm2, %v3045_v42, 0.0  ;;  %v1269_v32 = vrot.slane %v1268_v38, 1 }
 0x355   : > { %v3055_v52 = vpop.eup %2520  ;;  %v1335_v53 = vadd.f32 %v1334_v44, %v1333_v37  ;;  %v1341_v54 = vrot.slane %v1340_v51, 4  ;;  %v1375_v30 = vsel %vm1172_vm2, %v3051_v48, 0.0  ;;  %v1297_v36 = vsub.f32 %v2980_v1, %v1263_v46 }
 0x356   : > { %v1364_v55 = vrot.slane %v1363_v29, 2  ;;  %v1370_v34 = vadd.f32 %v1369_v49, %v1368_v43  ;;  %v1376_v57 = vrot.slane %v1375_v30, 4  ;;  %v1382_v59 = vsel %vm1172_vm2, %v3055_v52, 0.0 }
 0x357   : > { %v3062_v39 = vpop.eup %2522  ;;  %v1336_v61 = vrot.slane %v1335_v53, 2  ;;  %v1342_v62 = vadd.f32 %v1341_v54, %v1340_v51  ;;  %v1383_v0 = vrot.slane %v1382_v59, 4  ;;  %v1270_v2 = vmax.f32 %v1268_v38, %v1269_v32 }
 0x358   : > { %v3064_v41 = vpop.eup %2524  ;;  %v1365_v3 = vadd.f32 %v1364_v55, %v1363_v29  ;;  %v1371_v50 = vrot.slane %v1370_v34, 2  ;;  %v1377_v4 = vadd.f32 %v1376_v57, %v1375_v30  ;;  %v1347_v1 = vsel %vm1172_vm2, %v3062_v39, 0.0 }
 0x359   : > { %v1337_v5 = vadd.f32 %v1336_v61, %v1335_v53  ;;  %v1343_v8 = vrot.slane %v1342_v62, 2  ;;  %v1384_v9 = vadd.f32 %v1383_v0, %v1382_v59  ;;  %v1348_v10 = vrot.slane %v1347_v1, 4 }
 0x35a   : > { %v1366_v12 = vrot.slane %v1365_v3, 1  ;;  %v1372_v14 = vadd.f32 %v1371_v50, %v1370_v34  ;;  %v1378_v15 = vrot.slane %v1377_v4, 2  ;;  %v1354_v16 = vsel %vm1172_vm2, %v3064_v41, 0.0 }
 0x35b   : > { %v1338_v18 = vrot.slane %v1337_v5, 1  ;;  %v1344_v21 = vadd.f32 %v1343_v8, %v1342_v62  ;;  %v1385_v22 = vrot.slane %v1384_v9, 2  ;;  %v1349_v26 = vadd.f32 %v1348_v10, %v1347_v1 }
 0x35c   : > { %v1367_v27 = vadd.f32 %v1366_v12, %v1365_v3  ;;  %v1373_v28 = vrot.slane %v1372_v14, 1  ;;  %v1379_v35 = vadd.f32 %v1378_v15, %v1377_v4  ;;  %v1355_v37 = vrot.slane %v1354_v16, 4 }
 0x35d   : > { %v1339_v38 = vadd.f32 %v1338_v18, %v1337_v5  ;;  %v1345_v43 = vrot.slane %v1344_v21, 1  ;;  %v1386_v44 = vadd.f32 %v1385_v22, %v1384_v9  ;;  %v1350_v46 = vrot.slane %v1349_v26, 2  ;;  %v3076_v5 = vpop.permute.xlu0 %1477 }
 0x35e   : > { %v1374_v29 = vadd.f32 %v1373_v28, %v1372_v14  ;;  %2526 = vrcp.f32 %v1367_v27  ;;  %v1380_v49 = vrot.slane %v1379_v35, 1  ;;  %v1356_v51 = vadd.f32 %v1355_v37, %v1354_v16 }
 0x35f   : > { %v1346_v32 = vadd.f32 %v1345_v43, %v1344_v21  ;;  %2528 = vrcp.f32 %v1339_v38  ;;  %v1387_v53 = vrot.slane %v1386_v44, 1  ;;  %v1351_v54 = vadd.f32 %v1350_v46, %v1349_v26 }
 0x360   : > { %2530 = vrcp.f32 %v1374_v29  ;;  %v1381_v30 = vadd.f32 %v1380_v49, %v1379_v35  ;;  %v1357_v55 = vrot.slane %v1356_v51, 2  ;;  %v1243_v34 = vsel %vm1172_vm2, %v2986_v17, -inf }
 0x361   : > { %2532 = vrcp.f32 %v1346_v32  ;;  %v1388_v57 = vadd.f32 %v1387_v53, %v1386_v44  ;;  %v1352_v59 = vrot.slane %v1351_v54, 1  ;;  %v1325_v61 = vmul.f32 1.442695, %v1297_v36  ;;  %v1480_v27 = vpop.permute.xlu0 %1479 }
 0x362   : > { %2534 = vrcp.f32 %v1381_v30  ;;  %v1358_v62 = vadd.f32 %v1357_v55, %v1356_v51  ;;  %v1298_v0 = vsub.f32 %v3003_v56, %v1270_v2  ;;  %v1234_v3 = vrot.slane %v3043_v40, 1 }
 0x363   : > { %2536 = vrcp.f32 %v1388_v57  ;;  %v1353_v50 = vadd.f32 %v1352_v59, %v1351_v54  ;;  %v1241_v4 = vrot.slane %v3049_v47, 1  ;;  %v1274_v1 = vrot.slane %v3032_v23, 2 }
 0x364   : > { %v1359_v8 = vrot.slane %v1358_v62, 1  ;;  %2538 = vpow2.f32 %v1325_v61  ;;  %v1235_v9 = vmax.f32 %v3043_v40, %v1234_v3  ;;  %v1280_v36 = vmax.f32 %v3028_v19, %v1279_v31 }
 0x365   : > { %2540 = vrcp.f32 %v1353_v50  ;;  %v1242_v56 = vmax.f32 %v3049_v47, %v1241_v4  ;;  %v3085_v2 = vcombine.high %v2986_v17, %v2986_v17  ;;  %v1327_v12 = vmul.f32 1.442695, %v1298_v0 }
 0x366   : > { %v1360_v10 = vadd.f32 %v1359_v8, %v1358_v62  ;;  %v1293_v14 = vsub.f32 %v2982_v6, %v1235_v9  ;;  %v1275_v15 = vmax.f32 %v3032_v23, %v1274_v1  ;;  %v1244_v40 = vrot.slane %v1243_v34, 4 }
 0x367   : > { %v1294_v16 = vsub.f32 %v3013_v63, %v1242_v56  ;;  %v1281_v21 = vrot.slane %v1280_v36, 2  ;;  %v1250_v22 = vsel %vm1172_vm2, %v3085_v2, -inf }
 0x368   : > { %v2527_v18 = vpop.eup %2526  ;;  %2542 = vrcp.f32 %v1360_v10  ;;  %v1317_v47 = vmul.f32 1.442695, %v1293_v14  ;;  %v1276_v6 = vrot.slane %v1275_v15, 1  ;;  %v1245_v38 = vmax.f32 %v1243_v34, %v1244_v40 }
 0x369   : > { %v2529_v19 = vpop.eup %2528  ;;  %v1465_v31 = vmul.f32 %v2527_v18, %v3030_v20  ;;  %2544 = vpow2.f32 %v1327_v12  ;;  %v1319_v37 = vmul.f32 1.442695, %v1294_v16  ;;  %v1282_v46 = vmax.f32 %v1280_v36, %v1281_v21 }
 0x36a   : > { %v2531_v26 = vpop.eup %2530  ;;  %v1461_v28 = vmul.f32 %v2529_v19, %v3034_v24  ;;  %v1251_v29 = vrot.slane %v1250_v22, 4  ;;  %2546 = vpow2.f32 %v1317_v47  ;;  %v1277_v55 = vmax.f32 %v1275_v15, %v1276_v6 }
 0x36b   : > { %v2533_v23 = vpop.eup %2532  ;;  %v1466_v63 = vmul.f32 %v2531_v26, %v3039_v33  ;;  %v1493_v35 = vmul.f32 %v1480_v27, %v1465_v31  ;;  %2548 = vpow2.f32 %v1319_v37  ;;  %v1246_v1 = vrot.slane %v1245_v38, 2 }
 0x36c   : > { %v2535_v43 = vpop.eup %2534  ;;  %v1462_v44 = vmul.f32 %v2533_v23, %v3045_v42  ;;  %v1489_v20 = vmul.f32 %v3076_v5, %v1461_v28  ;;  %v1283_v36 = vrot.slane %v1282_v46, 1  ;;  %v1299_v56 = vsub.f32 %v2984_v11, %v1277_v55 }
 0x36d   : > { %v2537_v49 = vpop.eup %2536  ;;  %v1494_v51 = vmul.f32 %v1480_v27, %v1466_v63  ;;  %v1533_v32 = vsel %vm1172_vm2, %v1493_v35, 0.0  ;;  %v1467_v24 = vmul.f32 %v2535_v43, %v3051_v48  ;;  %v3110_v10 = vmax.f32 %v1250_v22, %v1251_v29 }
 0x36e   : > { %v3099_v53 = vpop.eup %2538  ;;  %v1534_v33 = vrot.slane %v1533_v32, 4  ;;  %v1490_v54 = vmul.f32 %v3076_v5, %v1462_v44  ;;  %v1505_v30 = vsel %vm1172_vm2, %v1489_v20, 0.0  ;;  %v1468_v59 = vmul.f32 %v2537_v49, %v3055_v52 }
 0x36f   : > { %v2541_v42 = vpop.eup %2540  ;;  %v1540_v34 = vsel %vm1172_vm2, %v1494_v51, 0.0  ;;  %v1506_v57 = vrot.slane %v1505_v30, 4  ;;  %v1495_v0 = vmul.f32 %v1480_v27, %v1467_v24  ;;  %v1417_v9 = vsel %vm1172_vm2, %v3099_v53, 0.0 }
 0x370   : > { %v1535_v61 = vadd.f32 %v1534_v33, %v1533_v32  ;;  %v1541_v62 = vrot.slane %v1540_v34, 4  ;;  %v1512_v48 = vsel %vm1172_vm2, %v1490_v54, 0.0  ;;  %v1463_v4 = vmul.f32 %v2541_v42, %v3062_v39 }
 0x371   : > { %v1507_v3 = vadd.f32 %v1506_v57, %v1505_v30  ;;  %v1513_v50 = vrot.slane %v1512_v48, 4  ;;  %v1496_v14 = vmul.f32 %v1480_v27, %v1468_v59  ;;  %v1547_v39 = vsel %vm1172_vm2, %v1495_v0, 0.0 }
 0x372   : > { %v2543_v8 = vpop.eup %2542  ;;  %v1536_v40 = vrot.slane %v1535_v61, 2  ;;  %v1542_v18 = vadd.f32 %v1541_v62, %v1540_v34  ;;  %v1491_v21 = vmul.f32 %v3076_v5, %v1463_v4  ;;  %v1418_v11 = vrot.slane %v1417_v9, 4 }
 0x373   : > { %v1508_v52 = vrot.slane %v1507_v3, 2  ;;  %v1514_v12 = vadd.f32 %v1513_v50, %v1512_v48  ;;  %v1464_v15 = vmul.f32 %v2543_v8, %v3064_v41  ;;  %v3113_v16 = vpop.eup %2544  ;;  %v1284_v26 = vmax.f32 %v1282_v46, %v1283_v36 }
 0x374   : > { %v1519_v22 = vsel %vm1172_vm2, %v1491_v21, 0.0  ;;  %v1329_v28 = vmul.f32 1.442695, %v1299_v56  ;;  %v1247_v27 = vmax.f32 %v1245_v38, %v1246_v1  ;;  %v3119_v6 = vpop.eup %2546  ;;  %v1548_v23 = vrot.slane %v1547_v39, 4 }
 0x375   : > { %v1509_v19 = vadd.f32 %v1508_v52, %v1507_v3  ;;  %v1515_v31 = vrot.slane %v1514_v12, 2  ;;  %v1492_v47 = vmul.f32 %v3076_v5, %v1464_v15  ;;  %v1520_v63 = vrot.slane %v1519_v22, 4  ;;  %v3125_v5 = vpop.eup %2548 }
 0x376   : > { %v1537_v37 = vadd.f32 %v1536_v40, %v1535_v61  ;;  %v3123_v43 = vsel %vm1172_vm2, %v1496_v14, 0.0  ;;  %v1419_v20 = vadd.f32 %v1418_v11, %v1417_v9  ;;  %v1543_v29 = vrot.slane %v1542_v18, 2 }
 0x377   : > { %v1516_v41 = vadd.f32 %v1515_v31, %v1514_v12  ;;  %v1526_v35 = vsel %vm1172_vm2, %v1492_v47, 0.0  ;;  %v1510_v49 = vrot.slane %v1509_v19, 1  ;;  %v1521_v46 = vadd.f32 %v1520_v63, %v1519_v22 }
 0x378   : > { %v1527_v44 = vrot.slane %v1526_v35, 4  ;;  %v1424_v38 = vsel %vm1172_vm2, %v3113_v16, 0.0  ;;  %v1389_v33 = vsel %vm1172_vm2, %v3119_v6, 0.0  ;;  %v1555_v54 = vrot.slane %v3123_v43, 4 }
 0x379   : > { %v1517_v51 = vrot.slane %v1516_v41, 1  ;;  %v1425_v24 = vrot.slane %v1424_v38, 4  ;;  %v1522_v30 = vrot.slane %v1521_v46, 2  ;;  %v1420_v55 = vrot.slane %v1419_v20, 2 }
 0x37a   : > { %v1528_v32 = vadd.f32 %v1527_v44, %v1526_v35  ;;  %v1390_v42 = vrot.slane %v1389_v33, 4  ;;  %v1538_v34 = vrot.slane %v1537_v37, 1  ;;  %v1549_v57 = vadd.f32 %v1548_v23, %v1547_v39 }
 0x37b   : > { %v1396_v61 = vsel %vm1172_vm2, %v3125_v5, 0.0  ;;  %v1544_v62 = vadd.f32 %v1543_v29, %v1542_v18  ;;  %v1511_v48 = vadd.f32 %v1510_v49, %v1509_v19  ;;  %v1523_v0 = vadd.f32 %v1522_v30, %v1521_v46 }
 0x37c   : > { %v1529_v59 = vrot.slane %v1528_v32, 2  ;;  %v1391_v3 = vadd.f32 %v1390_v42, %v1389_v33  ;;  %v1518_v50 = vadd.f32 %v1517_v51, %v1516_v41  ;;  %v1426_v1 = vadd.f32 %v1425_v24, %v1424_v38 }
 0x37d   : > { %v1397_v8 = vrot.slane %v1396_v61, 4  ;;  %v1524_v9 = vrot.slane %v1523_v0, 1  ;;  %v1421_v36 = vadd.f32 %v1420_v55, %v1419_v20  ;;  %v1300_v52 = vsub.f32 %v3022_v7, %v1284_v26 }
 0x37e   : > { %v1530_v4 = vadd.f32 %v1529_v59, %v1528_v32  ;;  %v1392_v56 = vrot.slane %v1391_v3, 2  ;;  %v3135_v12 = vadd.f32 %v1538_v34, %v1537_v37  ;;  %v1550_v14 = vrot.slane %v1549_v57, 2 }
 0x37f   : > { %v1398_v40 = vadd.f32 %v1397_v8, %v1396_v61  ;;  %v1617_v39 = vpack.c.bf16 %v1511_v48, %v1511_v48  ;;  %2550 = vpow2.f32 %v1329_v28  ;;  %v1331_v18 = vmul.f32 1.442695, %v1300_v52 }
 0x380   : > { %v1531_v15 = vrot.slane %v1530_v4, 1  ;;  %v1393_v21 = vadd.f32 %v1392_v56, %v1391_v3  ;;  %v1618_v19 = vpack.c.bf16 %v1518_v50, %v1518_v50  ;;  %v1525_v31 = vadd.f32 %v1524_v9, %v1523_v0 }
 0x381   : > { %v1427_v47 = vrot.slane %v1426_v1, 2  ;;  %v1399_v11 = vrot.slane %v1398_v40, 2  ;;  %v1422_v22 = vrot.slane %v1421_v36, 1  ;;  %2552 = vpow2.f32 %v1331_v18 }
 0x382   : > { %v1394_v41 = vrot.slane %v1393_v21, 1  ;;  %v1248_v23 = vrot.slane %v1247_v27, 1  ;;  %v1551_v63 = vadd.f32 %v1550_v14, %v1549_v57  ;;  %v1532_v35 = vadd.f32 %v1531_v15, %v1530_v4 }
 0x383   : > { %v1400_v7 = vadd.f32 %v1399_v11, %v1398_v40  ;;  %v1253_v26 = vrot.slane %v3110_v10, 2  ;;  %v1658_v37 = vunpack.c.l.b16 %v1617_v39  ;;  %v1545_v29 = vrot.slane %v1544_v62, 1 }
 0x384   : > { %v1395_v44 = vadd.f32 %v1394_v41, %v1393_v21  ;;  %v1249_v20 = vmax.f32 %v1247_v27, %v1248_v23  ;;  %v1619_v49 = vpack.c.bf16 %v1525_v31, %v1525_v31  ;;  %v1428_v28 = vadd.f32 %v1427_v47, %v1426_v1 }
 0x385   : > { %v1401_v46 = vrot.slane %v1400_v7, 1  ;;  %v1254_v38 = vmax.f32 %v3110_v10, %v1253_v26  ;;  %v1659_v51 = vunpack.c.l.b16 %v1618_v19  ;;  %v1423_v32 = vadd.f32 %v1422_v22, %v1421_v36 }
 0x386   : > { %v1295_v24 = vsub.f32 %v2986_v17, %v1249_v20  ;;  %v1556_v33 = vadd.f32 %v1555_v54, %v3123_v43  ;;  %v1552_v42 = vrot.slane %v1551_v63, 1  ;;  %v1620_v34 = vpack.c.bf16 %v1532_v35, %v1532_v35 }
 0x387   : > { %v1402_v30 = vadd.f32 %v1401_v46, %v1400_v7  ;;  %v1255_v55 = vrot.slane %v1254_v38, 1  ;;  %2554 = vrcp.f32 %v1395_v44  ;;  %v1546_v59 = vadd.f32 %v1545_v29, %v1544_v62 }
 0x388   : > { %v1321_v57 = vmul.f32 1.442695, %v1295_v24  ;;  %v1557_v27 = vrot.slane %v1556_v33, 2  ;;  %v1660_v61 = vunpack.c.l.b16 %v1619_v49  ;;  %v1429_v48 = vrot.slane %v1428_v28, 1  ;;  %v3164_v24 = vpop.permute.xlu1 %1481 }
 0x389   : > { %2556 = vrcp.f32 %v1402_v30  ;;  %v1256_v0 = vmax.f32 %v1254_v38, %v1255_v55  ;;  %v3141_v3 = vpop.eup %2550  ;;  %v1621_v17 = vpack.c.bf16 %v3135_v12, %v3135_v12  ;;  %v1661_v43 = vunpack.c.l.b16 %v1620_v34 }
 0x38a   : > { %2558 = vpow2.f32 %v1321_v57  ;;  %v1558_v10 = vadd.f32 %v1557_v27, %v1556_v33  ;;  %v1431_v54 = vsel %vm1172_vm2, %v3141_v3, 0.0  ;;  %v1553_v1 = vadd.f32 %v1552_v42, %v1551_v63 }
 0x38b   : > { %v1296_v50 = vsub.f32 %v3085_v2, %v1256_v0  ;;  %v3148_v62 = vpop.eup %2552  ;;  %v1432_v4 = vrot.slane %v1431_v54, 4  ;;  %v1622_v8 = vpack.c.bf16 %v1546_v59, %v1546_v59  ;;  %v1675_v9 = vsel %vm1674_vm3, %v1659_v51, %v1658_v37 }
 0x38c   : > { %v1438_v36 = vsel %vm1172_vm2, %v3148_v62, 0.0  ;;  %v1677_v52 = vsel %vm1676_vm4, %v1660_v61, %v1675_v9  ;;  %v1559_v15 = vrot.slane %v1558_v10, 1  ;;  %v1662_v2 = vunpack.c.l.b16 %v1621_v17 }
 0x38d   : > { %v1323_v56 = vmul.f32 1.442695, %v1296_v50  ;;  %v1433_v12 = vadd.f32 %v1432_v4, %v1431_v54  ;;  %v1439_v14 = vrot.slane %v1438_v36, 4  ;;  %v1679_v40 = vsel %vm1678_vm5, %v1661_v43, %v1677_v52 }
 0x38e   : > { %v1430_v39 = vadd.f32 %v1429_v48, %v1428_v28  ;;  %v1663_v19 = vunpack.c.l.b16 %v1622_v8  ;;  %v1623_v31 = vpack.c.bf16 %v1553_v1, %v1553_v1  ;;  %v1681_v47 = vsel %vm1680_vm6, %v1662_v2, %v1679_v40 }
 0x38f   : > { %2560 = vpow2.f32 %v1323_v56  ;;  %v1434_v21 = vrot.slane %v1433_v12, 2  ;;  %v1440_v18 = vadd.f32 %v1439_v14, %v1438_v36  ;;  %v1560_v23 = vadd.f32 %v1559_v15, %v1558_v10 }
 0x390   : > { %v1683_v63 = vsel %vm1682_vm7, %v1663_v19, %v1681_v47  ;;  %2562 = vrcp.f32 %v1423_v32  ;;  %v1664_v29 = vunpack.c.l.b16 %v1623_v31 }
 0x391   : > { %v2555_v11 = vpop.eup %2554  ;;  %v1435_v22 = vadd.f32 %v1434_v21, %v1433_v12  ;;  %v1441_v41 = vrot.slane %v1440_v18, 2  ;;  %2564 = vrcp.f32 %v1430_v39  ;;  %v1624_v46 = vpack.c.bf16 %v1560_v23, %v1560_v23  ;;  %v1484_v12 = vpop.permute.xlu1 %1483 }
 0x392   : > { %v1469_v38 = vmul.f32 %v2555_v11, %v3119_v6  ;;  %v1685_v32 = vsel %vm1684_vm8, %v1664_v29, %v1683_v63 }
 0x393   : > { %v2557_v35 = vpop.eup %2556  ;;  %v1436_v26 = vrot.slane %v1435_v22, 1  ;;  %v1442_v37 = vadd.f32 %v1441_v41, %v1440_v18  ;;  %v1665_v34 = vunpack.c.l.b16 %v1624_v46 }
 0x394   : > { %v3157_v7 = vpop.eup %2558  ;;  %v1470_v44 = vmul.f32 %v2557_v35, %v3125_v5  ;;  %v1497_v6 = vmul.f32 %v3164_v24, %v1469_v38 }
 0x395   : > { %v1403_v20 = vsel %vm1172_vm2, %v3157_v7, 0.0  ;;  %v1437_v49 = vadd.f32 %v1436_v26, %v1435_v22  ;;  %v1443_v28 = vrot.slane %v1442_v37, 1  ;;  %v3173_v27 = vsel %vm1686_vm9, %v1665_v34, %v1685_v32 }
 0x396   : > { %v1404_v51 = vrot.slane %v1403_v20, 4  ;;  %v1498_v5 = vmul.f32 %v3164_v24, %v1470_v44  ;;  %v1561_v43 = vsel %vm1172_vm2, %v1497_v6, 0.0 }
 0x397   : > { %v1444_v33 = vadd.f32 %v1443_v28, %v1442_v37  ;;  %2566 = vrcp.f32 %v1437_v49  ;;  %v1562_v56 = vrot.slane %v1561_v43, 4 }
 0x398   : > { %v1405_v55 = vadd.f32 %v1404_v51, %v1403_v20  ;;  %v1568_v48 = vsel %vm1172_vm2, %v1498_v5, 0.0 }
 0x399   : > { %v3166_v30 = vpop.eup %2560  ;;  %2568 = vrcp.f32 %v1444_v33  ;;  %v1569_v4 = vrot.slane %v1568_v48, 4 }
 0x39a   : > { %v1410_v42 = vsel %vm1172_vm2, %v3166_v30, 0.0  ;;  %v1406_v57 = vrot.slane %v1405_v55, 2  ;;  %v2563_v61 = vpop.eup %2562 }
 0x39b   : > { %v1411_v59 = vrot.slane %v1410_v42, 4  ;;  %v2565_v10 = vpop.eup %2564  ;;  %v1473_v50 = vmul.f32 %v2563_v61, %v3099_v53  ;;  %v1570_v40 = vadd.f32 %v1569_v4, %v1568_v48  ;;  %v1563_v53 = vadd.f32 %v1562_v56, %v1561_v43 }
 0x39c   : > { %v1407_v0 = vadd.f32 %v1406_v57, %v1405_v55  ;;  %v1474_v8 = vmul.f32 %v2565_v10, %v3113_v16 }
 0x39d   : > { %v1412_v17 = vadd.f32 %v1411_v59, %v1410_v42  ;;  %v1501_v2 = vmul.f32 %v1484_v12, %v1473_v50  ;;  %v1571_v11 = vrot.slane %v1570_v40, 2  ;;  %v1564_v41 = vrot.slane %v1563_v53, 2 }
 0x39e   : > { %v1408_v54 = vrot.slane %v1407_v0, 1  ;;  %v1502_v21 = vmul.f32 %v1484_v12, %v1474_v8 }
 0x39f   : > { %v1413_v1 = vrot.slane %v1412_v17, 2  ;;  %v1589_v16 = vsel %vm1172_vm2, %v1501_v2, 0.0  ;;  %v1572_v26 = vadd.f32 %v1571_v11, %v1570_v40  ;;  %v1565_v44 = vadd.f32 %v1564_v41, %v1563_v53 }
 0x3a0   : > { %v1409_v9 = vadd.f32 %v1408_v54, %v1407_v0  ;;  %v1596_v22 = vsel %vm1172_vm2, %v1502_v21, 0.0  ;;  %v1590_v23 = vrot.slane %v1589_v16, 4 }
 0x3a1   : > { %v2567_v36 = vpop.eup %2566  ;;  %v1414_v52 = vadd.f32 %v1413_v1, %v1412_v17  ;;  %v1597_v35 = vrot.slane %v1596_v22, 4  ;;  %v1573_v46 = vrot.slane %v1572_v26, 1  ;;  %v1566_v33 = vrot.slane %v1565_v44, 1 }
 0x3a2   : > { %v1475_v14 = vmul.f32 %v2567_v36, %v3141_v3  ;;  %2570 = vrcp.f32 %v1409_v9  ;;  %v1591_v49 = vadd.f32 %v1590_v23, %v1589_v16 }
 0x3a3   : > { %v2569_v15 = vpop.eup %2568  ;;  %v1415_v39 = vrot.slane %v1414_v52, 1  ;;  %v1598_v28 = vadd.f32 %v1597_v35, %v1596_v22  ;;  %v1574_v59 = vadd.f32 %v1573_v46, %v1572_v26  ;;  %v1567_v0 = vadd.f32 %v1566_v33, %v1565_v44 }
 0x3a4   : > { %v1476_v18 = vmul.f32 %v2569_v15, %v3148_v62  ;;  %v1503_v19 = vmul.f32 %v1484_v12, %v1475_v14  ;;  %v1592_v42 = vrot.slane %v1591_v49, 2 }
 0x3a5   : > { %v1416_v31 = vadd.f32 %v1415_v39, %v1414_v52  ;;  %v1599_v57 = vrot.slane %v1598_v28, 2  ;;  %v1626_v4 = vpack.c.bf16 %v1574_v59, %v1574_v59  ;;  %v1625_v36 = vpack.c.bf16 %v1567_v0, %v1567_v0 }
 0x3a6   : > { %v1504_v47 = vmul.f32 %v1484_v12, %v1476_v18  ;;  %v1603_v3 = vsel %vm1172_vm2, %v1503_v19, 0.0  ;;  %v1593_v17 = vadd.f32 %v1592_v42, %v1591_v49 }
 0x3a7   : > { %2572 = vrcp.f32 %v1416_v31  ;;  %v1604_v62 = vrot.slane %v1603_v3, 4  ;;  %v1600_v50 = vadd.f32 %v1599_v57, %v1598_v28  ;;  %v1667_v14 = vunpack.c.l.b16 %v1626_v4 }
 0x3a8   : > { %v1610_v63 = vsel %vm1172_vm2, %v1504_v47, 0.0  ;;  %v1594_v52 = vrot.slane %v1593_v17, 1  ;;  %v1666_v39 = vunpack.c.l.b16 %v1625_v36 }
 0x3a9   : > { %v1611_v20 = vrot.slane %v1610_v63, 4  ;;  %v1605_v51 = vadd.f32 %v1604_v62, %v1603_v3 }
 0x3aa   : > { %v1595_v53 = vadd.f32 %v1594_v52, %v1593_v17  ;;  %v1688_v16 = vsel %vm1674_vm3, %v1667_v14, %v1666_v39 }
 0x3ab   : > { %v1612_v55 = vadd.f32 %v1611_v20, %v1610_v63  ;;  %v1606_v61 = vrot.slane %v1605_v51, 2 }
 0x3ac   : > { %v2571_v37 = vpop.eup %2570  ;;  %v1629_v23 = vpack.c.bf16 %v1595_v53, %v1595_v53 }
 0x3ad   : > { %v1471_v29 = vmul.f32 %v2571_v37, %v3157_v7  ;;  %v1613_v10 = vrot.slane %v1612_v55, 2  ;;  %v1607_v8 = vadd.f32 %v1606_v61, %v1605_v51 }
 0x3ae   : > { %v1670_v20 = vunpack.c.l.b16 %v1629_v23 }
 0x3af   : > { %v1499_v38 = vmul.f32 %v3164_v24, %v1471_v29  ;;  %v1614_v56 = vadd.f32 %v1613_v10, %v1612_v55  ;;  %v1608_v40 = vrot.slane %v1607_v8, 1  ;;  %v2265_v55 = vld [vmem:[%s3372_s6] ss:$0 sm:$0xff] }
 0x3b1   : > { %v2573_v32 = vpop.eup %2572  ;;  %v1575_v5 = vsel %vm1172_vm2, %v1499_v38, 0.0  ;;  %v1615_v18 = vrot.slane %v1614_v56, 1  ;;  %v1609_v22 = vadd.f32 %v1608_v40, %v1607_v8 }
 0x3b2   : > { %v1472_v34 = vmul.f32 %v2573_v32, %v3166_v30  ;;  %v1576_v6 = vrot.slane %v1575_v5, 4 }
 0x3b3   : > { %v1616_v3 = vadd.f32 %v1615_v18, %v1614_v56  ;;  %v1631_v37 = vpack.c.bf16 %v1609_v22, %v1609_v22 }
 0x3b4   : > { %v1500_v7 = vmul.f32 %v3164_v24, %v1472_v34  ;;  %v1577_v48 = vadd.f32 %v1576_v6, %v1575_v5  ;;  %v1601_v24 = vrot.slane %v1600_v50, 1 }
 0x3b5   : > { %v1632_v62 = vpack.c.bf16 %v1616_v3, %v1616_v3  ;;  %v1672_v28 = vunpack.c.l.b16 %v1631_v37 }
 0x3b6   : > { %v1578_v43 = vrot.slane %v1577_v48, 2  ;;  %v1582_v54 = vsel %vm1172_vm2, %v1500_v7, 0.0  ;;  %v1602_v47 = vadd.f32 %v1601_v24, %v1600_v50 }
 0x3b7   : > { %v1583_v1 = vrot.slane %v1582_v54, 4  ;;  %v1673_v38 = vunpack.c.l.b16 %v1632_v62 }
 0x3b8   : > { %v1579_v9 = vadd.f32 %v1578_v43, %v1577_v48  ;;  %v1630_v26 = vpack.c.bf16 %v1602_v47, %v1602_v47 }
 0x3b9   : > { %v1584_v30 = vadd.f32 %v1583_v1, %v1582_v54 }
 0x3ba   : > { %v1580_v12 = vrot.slane %v1579_v9, 1  ;;  %v1671_v29 = vunpack.c.l.b16 %v1630_v26 }
 0x3bb   : > { %v1585_v15 = vrot.slane %v1584_v30, 2 }
 0x3bc   : > { %v1581_v2 = vadd.f32 %v1580_v12, %v1579_v9 }
 0x3bd   : > { %v1586_v21 = vadd.f32 %v1585_v15, %v1584_v30  ;;  %v2269_v15 = vld [vmem:[%s3372_s6 + $0x1] ss:$0 sm:$0xff] }
 0x3be   : > { %v1627_v19 = vpack.c.bf16 %v1581_v2, %v1581_v2  ;;  %v2270_v2 = vld [vmem:[%s3372_s6 + $0x2] ss:$0 sm:$0xff] }
 0x3bf   : > { %v1587_v31 = vrot.slane %v1586_v21, 1 }
 0x3c0   : > { %v1668_v11 = vunpack.c.l.b16 %v1627_v19 }
 0x3c1   : > { %v1588_v41 = vadd.f32 %v1587_v31, %v1586_v21 }
 0x3c2   : > { %v1689_v63 = vsel %vm1676_vm4, %v1668_v11, %v1688_v16 }
 0x3c3   : > { %v1628_v35 = vpack.c.bf16 %v1588_v41, %v1588_v41 }
 0x3c5   : > { %v1669_v44 = vunpack.c.l.b16 %v1628_v35 }
 0x3c7   : > { %v1690_v49 = vsel %vm1678_vm5, %v1669_v44, %v1689_v63  ;;  %v2485_v44 = vld [vmem:[%s3373_s7 + $0x8] sm:$0xff]  }
 0x3c8   : > { %v1691_v46 = vsel %vm1680_vm6, %v1670_v20, %v1690_v49 }
 0x3c9   : > { %v1692_v51 = vsel %vm1682_vm7, %v1671_v29, %v1691_v46 }
 0x3ca   : > { %v1693_v32 = vsel %vm1684_vm8, %v1672_v28, %v1692_v51 }
 0x3cb   : > { %v1694_v33 = vsel %vm1686_vm9, %v1673_v38, %v1693_v32 }
 0x3cc   : > { %v1695_v5 = vpack.c.b16 %v1694_v33, %v3173_v27  ;;  %v2271_v33 = vld [vmem:[%s3372_s6 + $0x3] ss:$0 sm:$0xff] }
 0x3ce   : > { %2388 = vmatmul.mubr.msk.bf16.vlgmr.msra.gmra.mrb[4].mxu0 %vm766_vm1, %v1695_v5 }
 0x3cf   : > { %2395 = vmatprep.mubr.msk.bf16.mxu0 %vm2659_vm0, %v2658_v45 }
 0x4a1   : > { %v1745_v42 = vpop.f32.mrb[4].mxu0 }
 0x4a2   : > { %v1746_v34 = vadd.f32 %v2265_v55, %v1745_v42  ;;  %v2389_v6 = vpop.f32.mrb[5].mxu0  ;;  %v2272_v42 = vld [vmem:[%s3372_s6 + $0x4] ss:$0 sm:$0xff] }
 0x4a3   : > { %v1748_v57 = vpop.f32.mrb[6].mxu0 }
 0x4a4   : > { %v1749_v59 = vadd.f32 %v2265_v55, %v1748_v57  ;;  %v2390_v61 = vpop.f32.mrb[7].mxu0  ;;  %v1754_v7 = vsel %vm766_vm1, %v1746_v34, 0.0 }
 0x4a5   : > { %1755 = vadd.xlane.f32.xlu0 %v1754_v7  ;;  %v2488_v61 = vld [vmem:[%s3375_s9 + $0x4] ss:$16 sps:$4 sm:$0xff]   ;;  %v2491_v7 = vld [vmem:[%s3375_s9 + $0xc] ss:$16 sps:$4 sm:$0xff]  }
 0x4a6   : > { %v1757_v27 = vsel %vm766_vm1, %v1749_v59, 0.0  ;;  %2036 = vmatprep.subr.bf16.mxu1 %v2488_v61 }
 0x4a7   : > { %1758 = vadd.xlane.f32.xlu1 %v1757_v27  ;;  %v2486_v27 = vld [vmem:[%s3375_s9] ss:$16 sps:$4 sm:$0xff]  }
 0x4a8   : > { %2037 = vmatpush1.bf16.msra.mxu1 %v2486_v27 }
 0x532   : > { %v1756_v48 = vpop.xlane.xlu0 %1755 }
 0x533   : > { %v1761_v0 = vmul.f32 0.03125, %v1756_v48  ;;  %v2489_v48 = vld [vmem:[%s3375_s9 + $0x8] ss:$16 sps:$4 sm:$0xff]  }
 0x534   : > { %v1759_v10 = vpop.xlane.xlu1 %1758 }
 0x535   : > { %v1763_v17 = vsub.f32 %v1746_v34, %v1761_v0  ;;  %v1762_v43 = vmul.f32 0.03125, %v1759_v10  ;;  %v2494_v0 = vld [vmem:[%s3375_s9 + $0x24] ss:$16 sps:$4 sm:$0xff]   ;;  %v2497_v10 = vld [vmem:[%s3375_s9 + $0x2c] ss:$16 sps:$4 sm:$0xff]  }
 0x536   : > { %2038 = vmatprep.subr.bf16.mxu1 %v2494_v0 }
 0x537   : > { %v1764_v54 = vsub.f32 %v1749_v59, %v1762_v43  ;;  %v1765_v50 = vmul.f32 %v1763_v17, %v1763_v17  ;;  %v2495_v43 = vld [vmem:[%s3375_s9 + $0x28] ss:$16 sps:$4 sm:$0xff]  }
 0x539   : > { %v1767_v4 = vsel %vm766_vm1, %v1765_v50, 0.0  ;;  %v1766_v1 = vmul.f32 %v1764_v54, %v1764_v54  ;;  %v2503_v50 = vld [vmem:[%s3375_s9 + $0x4c] ss:$16 sps:$4 sm:$0xff]  }
 0x53a   : > { %1768 = vadd.xlane.f32.xlu0 %v1767_v4  ;;  %v2498_v4 = vld [vmem:[%s3375_s9 + $0x40] ss:$16 sps:$4 sm:$0xff]  }
 0x53b   : > { %v1770_v8 = vsel %vm766_vm1, %v1766_v1, 0.0  ;;  %v2501_v1 = vld [vmem:[%s3375_s9 + $0x48] ss:$16 sps:$4 sm:$0xff]  }
 0x53e   : > { %1771 = vadd.xlane.f32.xlu0 %v1770_v8  ;;  %v2506_v8 = vld [vmem:[%s3375_s9 + $0x64] ss:$16 sps:$4 sm:$0xff]  }
 0x5c7   : > { %v1769_v9 = vpop.xlane.xlu0 %1768 }
 0x5c8   : > { %v1773_v36 = vmul.f32 0.03125, %v1769_v9  ;;  %v2509_v9 = vld [vmem:[%s3375_s9 + $0x6c] ss:$16 sps:$4 sm:$0xff]  }
 0x5ca   : > { %v1775_v30 = vadd.f32 1e-05, %v1773_v36  ;;  %v2504_v36 = vld [vmem:[%s3375_s9 + $0x60] ss:$16 sps:$4 sm:$0xff]  }
 0x5cb   : > { %v1772_v56 = vpop.xlane.xlu0 %1771 }
 0x5cc   : > { %2574 = vrsqrt.f32 %v1775_v30  ;;  %v1774_v52 = vmul.f32 0.03125, %v1772_v56  ;;  %v2507_v30 = vld [vmem:[%s3375_s9 + $0x68] ss:$16 sps:$4 sm:$0xff]   ;;  %v2663_v56 = vmov 0  }
 0x5cd   : > { %2068 = vmatprep.mubr.bf16.mxu1 %v2663_v56 }
 0x5ce   : > { %v1776_v12 = vadd.f32 1e-05, %v1774_v52  ;;  %v2273_v52 = vld [vmem:[%s3374_s8] ss:$0 sm:$0xff] }
 0x5d0   : > { %2576 = vrsqrt.f32 %v1776_v12 }
 0x5d6   : > { %v2575_v14 = vpop.eup %2574 }
 0x5d7   : > { %v1779_v24 = vmul.f32 %v2575_v14, %v1763_v17  ;;  %v2492_v17 = vld [vmem:[%s3375_s9 + $0x20] ss:$16 sps:$4 sm:$0xff]  }
 0x5d8   : > { %2039 = vmatpush1.bf16.msra.mxu1 %v2492_v17 }
 0x5d9   : > { %v1785_v40 = vmul.f32 %v2269_v15, %v1779_v24 }
 0x5da   : > { %v2577_v39 = vpop.eup %2576 }
 0x5db   : > { %v1791_v21 = vadd.f32 %v2270_v2, %v1785_v40  ;;  %v1780_v18 = vmul.f32 %v2577_v39, %v1764_v54  ;;  %v2500_v54 = vld [vmem:[%s3375_s9 + $0x44] ss:$16 sps:$4 sm:$0xff]  }
 0x5dc   : > { %2040 = vmatprep.subr.bf16.mxu1 %v2500_v54 }
 0x5dd   : > { %v1793_v53 = vadd.f32 %v1791_v21, %v2898_v58  ;;  %v1786_v19 = vmul.f32 %v2269_v15, %v1780_v18  ;;  %2041 = vmatpush1.bf16.msra.mxu1 %v2498_v4 }
 0x5de   : > { %2042 = vmatprep.subr.bf16.mxu1 %v2506_v8 }
 0x5df   : > { %v1797_v31 = vsel %vm766_vm1, %v1793_v53, 0.0  ;;  %v1792_v47 = vadd.f32 %v2270_v2, %v1786_v19 }
 0x5e0   : > { %1798 = vadd.xlane.f32.xlu1 %v1797_v31 }
 0x5e1   : > { %v1794_v16 = vadd.f32 %v1792_v47, %v2900_v60  ;;  %v2484_v60 = vld [vmem:[%s3373_s7] sm:$0xff]   ;;  %2043 = vmatpush1.bf16.msra.mxu1 %v2504_v36 }
 0x5e2   : > { %2392 = vmatpush3.bf16.msra.mxu0 %v2484_v60 }
 0x5e3   : > { %v1800_v11 = vsel %vm766_vm1, %v1794_v16, 0.0  ;;  %2393 = vmatprep.subr.bf16.mxu0 %v2658_v45 }
 0x5e4   : > { %1801 = vadd.xlane.f32.xlu0 %v1800_v11 }
 0x5e6   : > { %2394 = vmatpush3.bf16.msra.mxu0 %v2485_v44 }
 0x5e7   : > { %2079 = vmatprep.subr.bf16.mxu0 %v2491_v7 }
 0x66d   : > { %v1799_v22 = vpop.xlane.xlu1 %1798 }
 0x66e   : > { %v1803_v41 = vmul.f32 0.03125, %v1799_v22 }
 0x670   : > { %v1805_v3 = vsub.f32 %v1793_v53, %v1803_v41 }
 0x671   : > { %v1802_v23 = vpop.xlane.xlu0 %1801 }
 0x672   : > { %v1804_v63 = vmul.f32 0.03125, %v1802_v23  ;;  %v1807_v35 = vmul.f32 %v1805_v3, %v1805_v3  ;;  %v1930_v23 = vld [vmem:[%s3376_s10] sm:$0xf] }
 0x674   : > { %v1806_v26 = vsub.f32 %v1794_v16, %v1804_v63  ;;  %v1809_v37 = vsel %vm766_vm1, %v1807_v35, 0.0  ;;  %v1938_v63 = vsub.s32 1, %v2914_v13  ;;  %v1946_v35 = vsub.s32 3, %v2914_v13 }
 0x675   : > { %1810 = vadd.xlane.f32.xlu1 %v1809_v37 }
 0x676   : > { %v1808_v58 = vmul.f32 %v1806_v26, %v1806_v26 }
 0x678   : > { %v1812_v62 = vsel %vm766_vm1, %v1808_v58, 0.0  ;;  %v1939_v58 = vrot.slane %v1930_v23, %v1938_v63 }
 0x679   : > { %1813 = vadd.xlane.f32.xlu0 %v1812_v62  ;;  %v1947_v62 = vrot.slane %v1930_v23, %v1946_v35 }
 0x702   : > { %v1811_v20 = vpop.xlane.xlu1 %1810 }
 0x703   : > { %v1815_v29 = vmul.f32 0.03125, %v1811_v20 }
 0x705   : > { %v1817_v49 = vadd.f32 1e-05, %v1815_v29 }
 0x706   : > { %v1814_v28 = vpop.xlane.xlu0 %1813 }
 0x707   : > { %2578 = vrsqrt.f32 %v1817_v49  ;;  %v1816_v46 = vmul.f32 0.03125, %v1814_v28 }
 0x709   : > { %v1818_v38 = vadd.f32 1e-05, %v1816_v46 }
 0x70b   : > { %2580 = vrsqrt.f32 %v1818_v38 }
 0x711   : > { %v2579_v51 = vpop.eup %2578 }
 0x712   : > { %v1821_v32 = vmul.f32 %v2579_v51, %v1805_v3  ;;  %v1942_v3 = vsub.s32 2, %v2914_v13 }
 0x714   : > { %v1827_v5 = vmul.f32 %v2271_v33, %v1821_v32  ;;  %v1943_v37 = vrot.slane %v1930_v23, %v1942_v3 }
 0x715   : > { %v2581_v45 = vpop.eup %2580 }
 0x716   : > { %v1822_v55 = vmul.f32 %v2581_v45, %v1806_v26  ;;  %v1833_v6 = vadd.f32 %v2272_v42, %v1827_v5  ;;  %v1935_v26 = vrot.slane %v1930_v23, %v2918_v25  ;;  %v2586_v25 = vld [vmem:[%s2869_s15] sm:$0xff] }
 0x718   : > { %v1828_v34 = vmul.f32 %v2271_v33, %v1822_v55  ;;  %v2587_v33 = vld [vmem:[%s2869_s15 + $0x10] sm:$0xff] }
 0x71a   : > { %v1834_v57 = vadd.f32 %v2272_v42, %v1828_v34 }
 0x71c   : > { %v1835_v59 = vpack.c.bf16 %v1834_v57, %v1833_v6  ;;  %v2588_v6 = vld [vmem:[%s2869_s15 + $0x8] sm:$0xff] }
 0x71e   : > { %2396 = vmatmul.mubr.msk.bf16.vlgmr.msra.gmra.mrb[8].mxu0 %vm766_vm1, %v1835_v59  ;;  %v2589_v59 = vld [vmem:[%s2869_s15 + $0x18] sm:$0xff] }
 0x71f   : > { %2080 = vmatpush1.bf16.msra.mxu0 %v2489_v48  ;;  %2111 = vmatprep.mubr.bf16.mxu0 %v2663_v56  ;;  %v2590_v48 = vld [vmem:[%s2869_s15 + $0x20] sm:$0xff] }
 0x720   : > { %2081 = vmatprep.subr.bf16.mxu0 %v2497_v10  ;;  %v2591_v10 = vld [vmem:[%s2869_s15 + $0x30] sm:$0xff] }
 0x723   : > { %2082 = vmatpush1.bf16.msra.mxu0 %v2495_v43  ;;  %v2592_v43 = vld [vmem:[%s2869_s15 + $0x28] sm:$0xff] }
 0x724   : > { %2083 = vmatprep.subr.bf16.mxu0 %v2503_v50  ;;  %v2593_v50 = vld [vmem:[%s2869_s15 + $0x38] sm:$0xff] }
 0x727   : > { %2084 = vmatpush1.bf16.msra.mxu0 %v2501_v1 }
 0x728   : > { %2085 = vmatprep.subr.bf16.mxu0 %v2509_v9 }
 0x72b   : > { %2086 = vmatpush1.bf16.msra.mxu0 %v2507_v30 }
 0x7f1   : > { %v1896_v12 = vpop.f32.mrb[8].mxu0 }
 0x7f2   : > { %v1897_v14 = vadd.f32 %v2273_v52, %v1896_v12  ;;  %v2397_v15 = vpop.f32.mrb[9].mxu0 }
 0x7f3   : > { %v1899_v24 = vpop.f32.mrb[10].mxu0 }
 0x7f4   : > { %v1905_v2 = vmul.f32 0.70710677, %v1897_v14  ;;  %v1900_v40 = vadd.f32 %v2273_v52, %v1899_v24  ;;  %v2398_v39 = vpop.f32.mrb[11].mxu0  ;;  %v1903_v31 = vmul.f32 0.5, %v1897_v14 }
 0x7f6   : > { %2582 = verf.f32 %v1905_v2  ;;  %v1906_v21 = vmul.f32 0.70710677, %v1900_v40  ;;  %v1904_v47 = vmul.f32 0.5, %v1900_v40 }
 0x7f8   : > { %2584 = verf.f32 %v1906_v21 }
 0x800   : > { %v2583_v18 = vpop.eup %2582 }
 0x801   : > { %v1909_v53 = vadd.f32 1.0, %v2583_v18 }
 0x802   : > { %v2585_v19 = vpop.eup %2584 }
 0x803   : > { %v1910_v16 = vadd.f32 1.0, %v2585_v19  ;;  %v1911_v11 = vmul.f32 %v1909_v53, %v1903_v31 }
 0x805   : > { %v1912_v22 = vmul.f32 %v1910_v16, %v1904_v47 }
 0x807   : > { %v1913_v41 = vpack.c.bf16 %v1912_v22, %v1911_v11 }
 0x809   : > { %2293 = vmatmul.mubr.msk.bf16.vlgmr.msra.gmra.mrb[16].mxu1 %vm2032_vm10, %v1913_v41  ;;  %2294 = vmatmul.mubr.msk.bf16.vlgmr.msra.gmra.mrb[12].mxu0 %vm2032_vm10, %v1913_v41 }
 0x8dc   : > { %v2070_v60 = vpop.f32.mrb[16].mxu1  ;;  %v2113_v44 = vpop.f32.mrb[12].mxu0 }
 0x8dd   : > { %v2071_v20 = vadd.f32 %v2070_v60, %v1935_v26  ;;  %v2114_v29 = vadd.f32 %v2113_v44, %v1943_v37  ;;  %v2072_v49 = vpop.f32.mrb[17].mxu1  ;;  %v2115_v28 = vpop.f32.mrb[13].mxu0 }
 0x8de   : > { %v2073_v46 = vadd.f32 %v2072_v49, %v1939_v58  ;;  %v2116_v13 = vadd.f32 %v2115_v28, %v1947_v62  ;;  %v2074_v38 = vpop.f32.mrb[18].mxu1  ;;  %v2117_v51 = vpop.f32.mrb[14].mxu0 }
 0x8df   : > { %v2122_v32 = vadd.f32 %v2586_v25, %v2071_v20  ;;  %v2124_v45 = vadd.f32 %v2587_v33, %v2114_v29  ;;  %v2075_v5 = vadd.f32 %v2074_v38, %v1935_v26  ;;  %v2118_v55 = vadd.f32 %v2117_v51, %v1943_v37  ;;  %v2076_v42 = vpop.f32.mrb[19].mxu1  ;;  %v2119_v34 = vpop.f32.mrb[15].mxu0 }
 0x8e0   : > { %v2123_v57 = vadd.f32 %v2588_v6, %v2073_v46  ;;  %v2125_v61 = vadd.f32 %v2589_v59, %v2116_v13  ;;  %v2077_v7 = vadd.f32 %v2076_v42, %v1939_v58  ;;  %v2120_v27 = vadd.f32 %v2119_v34, %v1947_v62 }
 0x8e1   : > { %2130 = vst [vmem:[%s3297_s29] sm:$0xff] %v2122_v32  ;;  %2132 = vst [vmem:[%s3297_s29 + $0x10] sm:$0xff] %v2124_v45  ;;  %v2126_v0 = vadd.f32 %v2590_v48, %v2075_v5  ;;  %v2128_v17 = vadd.f32 %v2591_v10, %v2118_v55 }
 0x8e2   : > { %2131 = vst [vmem:[%s3297_s29 + $0x8] sm:$0xff] %v2123_v57  ;;  %2133 = vst [vmem:[%s3297_s29 + $0x18] sm:$0xff] %v2125_v61  ;;  %v2127_v54 = vadd.f32 %v2592_v43, %v2077_v7  ;;  %v2129_v4 = vadd.f32 %v2593_v50, %v2120_v27 }
 0x8e3   : > { %2134 = vst [vmem:[%s3297_s29 + $0x20] sm:$0xff] %v2126_v0  ;;  %2136 = vst [vmem:[%s3297_s29 + $0x30] sm:$0xff] %v2128_v17 }
 0x8e4   : > { %2135 = vst [vmem:[%s3297_s29 + $0x28] sm:$0xff] %v2127_v54  ;;  %2137 = vst [vmem:[%s3297_s29 + $0x38] sm:$0xff] %v2129_v4 }
 0x8e5   : > { %2607 = shalt.err (!%p2604_p3)
}
 0x8e6   : > { %s2608_s15 = scalar_lea.hbm %s3311_s14, 1024  ;;  %s2612_s29 = scalar_lea.hbm %s3377_s11, 2048 }
 0x8e7   : > { %p2609_p4 = scmp.ne.s32.totalorder %s3311_s14, %s2608_s15  ;;  %p2613_p9 = scmp.lt.u32.totalorder %s3311_s14, %s3377_s11 }
 0x8e8   : > { %p2614_p10 = scmp.lt.u32.totalorder %s2612_s29, %s2608_s15  ;;  %p2616_p12 = scmp.lt.u32.totalorder %s2608_s15, %s3311_s14 }
 0x8e9   : > { %p2610_p7 = pnand %p2609_p4, %p2765_p5 }
 0x8ea   : > { %p2615_p11 = por %p2614_p10, %p2613_p9 }
 0x8eb   : > { %p2611_p8 = pneg %p2610_p7 }
 0x8ec   : > { %p2617_p13 = por %p2616_p12, %p2615_p11 }
 0x8ee   : > { %p2618_p0 = pnand %p2617_p13, %p2611_p8 }
 0x8f0   : > { %2621 = shalt.err (!%p2618_p0)
}
 0x8f1   : > { %s2665_s12 = smov 512   ;;  %s2666_s16 = smov 32  }
 0x8f2   : > { %2399 = dma.vmem_to_hbm [thread:$0]  (%p2765_p5), %s3313_s30, 1024, %s3311_s14, %s3325_s26, %s2665_s12, %s2665_s12, %s2666_s16  }
 0x8f3 PF: > { %p2405_p1 = scmp.ge.s32.totalorder %s2656_s20, 2  ;;  %s2168_s24 = sand.u32 1, %s2644_s17  }
 0x8f4   : > { %s2169_s22 = scalar_lea.sflag [#allocation3], %s2168_s24 }
 0x8f5   : > { %p2402_p2 = pnand %p2405_p1, %p2769_p6 }
 0x8f7   : > { %2639 = dma.done.wait (!%p2402_p2), %s2169_s22, 1024  }
 0x8f8   : > { %2641 = vsyncadd (!%p2402_p2), %s2169_s22, 4294966272  ;;  %s3383_s15 = sld [smem:[#allocation5_spill]]  ;;  %s3384_s19 = sld [smem:[#allocation6_spill]] }
 0x8f9   : > { %p21_p3 = scmp.ge.s32.totalorder %s2752_s23, 4   ;;  %s3385_s17 = smov %s2648_s18 }
 0x8fa   : > { %s3387_s20 = smov %s2752_s23 }
 0x8fb   :  { %23 = sbr.rel (!%p21_p3) target bundleno = 3 (0x3), region = 99 }
 0x8fe   : > { %s3386_s18 = smov %s3383_s15 }
 0x902   :  { %2174 = vsyncpa [#allocation3], 1 }
 0x903   :  { %2176 = vsyncpa [#allocation3 + $0x1], 1 }

</bundles_post_ra>
